<compile_context>
chip_gen: v7x
topology: tpu7x:2x2x1
jax: 0.10.0
libtpu: 0.0.40
codegen_flags: <defaults>
</compile_context>

<pallas_src>
import functools
import math

import numpy as np
import jax
import jax.numpy as jnp
from jax.experimental import pallas as pl
from jax.experimental.pallas import tpu as pltpu

BN_EPS = 1e-5
INV_1414 = 1.0 / 1.414


def _round_up(x, m):
    return ((x + m - 1) // m) * m


def _erf(x):
    # Abramowitz & Stegun 7.1.26 (|err| < 1.5e-7).  exp + approx reciprocal only,
    # so it lowers to VPU/EUP work; PyTorch nn.GELU() is the exact erf GELU.
    a1, a2, a3, a4, a5 = 0.254829592, -0.284496736, 1.421413741, -1.453152027, 1.061405429
    p = 0.3275911
    sign = jnp.where(x >= 0.0, 1.0, -1.0)
    ax = jnp.abs(x)
    t = pl.reciprocal(1.0 + p * ax, approx=True)
    poly = ((((a5 * t + a4) * t + a3) * t + a2) * t + a1) * t
    return sign * (1.0 - poly * jnp.exp(-ax * ax))


def _gelu_exact(x):
    return 0.5 * x * (1.0 + _erf(x * 0.7071067811865476))


def _write_stats(stats_ref, y):
    # Rows 0/1 of the (8, Ep) stats block hold per-channel sum / sum-of-squares.
    stats_ref[0:1, :] = jnp.sum(y, axis=0, keepdims=True)
    stats_ref[1:2, :] = jnp.sum(y * y, axis=0, keepdims=True)
    stats_ref[2:8, :] = jnp.zeros((6, y.shape[1]), jnp.float32)


# --------------------------- kernels ----------------------------------------


def _attn_kernel(x_ref, wqkv_ref, bqkv_ref,
                 wqi_ref, wki_ref, wvi_ref, bqi_ref, bki_ref, bvi_ref,
                 wo_ref, bo_ref, waf_ref, baf_ref,
                 y_ref, stats_ref,
                 *, nheads, seqs, seq_len, d_pad, head_pad, inv_sqrt_hd):
    x = x_ref[...]                                    # (seqs*seq_len, Ep) f32
    xb = x.astype(jnp.bfloat16)

    # input_to_qkv1: one fused (Ep -> 3*Dp) matmul, bf16 in / f32 accumulate.
    qkv = jnp.dot(xb, wqkv_ref[...], preferred_element_type=jnp.float32) + bqkv_ref[...]
    q0 = qkv[:, 0 * d_pad:1 * d_pad].astype(jnp.bfloat16)
    k0 = qkv[:, 1 * d_pad:2 * d_pad].astype(jnp.bfloat16)
    v0 = qkv[:, 2 * d_pad:3 * d_pad].astype(jnp.bfloat16)

    # MHA in_proj: full-width matmuls; heads live in aligned 128-lane blocks.
    q = jnp.dot(q0, wqi_ref[...], preferred_element_type=jnp.float32) + bqi_ref[...]
    k = jnp.dot(k0, wki_ref[...], preferred_element_type=jnp.float32) + bki_ref[...]
    v = jnp.dot(v0, wvi_ref[...], preferred_element_type=jnp.float32) + bvi_ref[...]

    # Scaled dot-product attention per (sequence, head): 2-D matmuls on static
    # slices -- no 3-D einsums, no in-kernel (N, L, hd) reshapes.
    ctx_rows = []
    for t in range(seqs):
        rows = slice(t * seq_len, (t + 1) * seq_len)
        head_outs = []
        for h in range(nheads):
            cols = slice(h * head_pad, (h + 1) * head_pad)
            qh = q[rows, cols].astype(jnp.bfloat16)
            kh = k[rows, cols].astype(jnp.bfloat16)
            vh = v[rows, cols].astype(jnp.bfloat16)
            s = jax.lax.dot_general(qh, kh, (((1,), (1,)), ((), ())),
                                    preferred_element_type=jnp.float32) * inv_sqrt_hd
            s = s - jnp.max(s, axis=-1, keepdims=True)
            e = jnp.exp(s)
            p = e * pl.reciprocal(jnp.sum(e, axis=-1, keepdims=True), approx=True)
            head_outs.append(jnp.dot(p.astype(jnp.bfloat16), vh,
                                     preferred_element_type=jnp.float32))
        ctx_rows.append(jnp.concatenate(head_outs, axis=1))
    ctx = jnp.concatenate(ctx_rows, axis=0) if seqs > 1 else ctx_rows[0]

    # out_proj (one full-width matmul over concatenated heads) + attn1_to_fcn.
    attn = jnp.dot(ctx.astype(jnp.bfloat16), wo_ref[...],
                   preferred_element_type=jnp.float32) + bo_ref[...]
    a = jnp.dot(attn.astype(jnp.bfloat16), waf_ref[...],
                preferred_element_type=jnp.float32) + baf_ref[...]

    y1 = (a + x) * INV_1414                           # attn_out/1.414 + inputs/1.414
    y_ref[...] = y1
    _write_stats(stats_ref, y1)                       # BN1 partial sum / sumsq


def _mlp_kernel(y_ref, sc1_ref, sh1_ref, wf1_ref, bf1_ref, wf2_ref, bf2_ref,
                y2_ref, stats_ref):
    b = y_ref[...] * sc1_ref[...] + sh1_ref[...]      # norm1a applied (affine form)
    h = jnp.dot(b.astype(jnp.bfloat16), wf1_ref[...],
                preferred_element_type=jnp.float32) + bf1_ref[...]
    h = _gelu_exact(h)
    f = jnp.dot(h.astype(jnp.bfloat16), wf2_ref[...],
                preferred_element_type=jnp.float32) + bf2_ref[...]
    y2 = (f + b) * INV_1414
    y2_ref[...] = y2
    _write_stats(stats_ref, y2)                       # BN2 partial sum / sumsq


def _norm_kernel(y_ref, sc_ref, sh_ref, o_ref):
    o_ref[...] = y_ref[...] * sc_ref[...] + sh_ref[...]   # norm1b (affine form)


# --------------------------- wrapper -----------------------------------------


def _pad_matrix(w, rows, cols):
    out = jnp.zeros((rows, cols), jnp.float32)
    return out.at[: w.shape[0], : w.shape[1]].set(w)


def _pad_row(b, cols):
    out = jnp.zeros((1, cols), jnp.float32)
    return out.at[0, : b.shape[0]].set(b)


def _finalize_bn(stats, gamma_p, beta_p, count):
    st = stats.reshape(-1, 8, stats.shape[-1])
    total = jnp.sum(st[:, 0, :], axis=0)
    total_sq = jnp.sum(st[:, 1, :], axis=0)
    mean = total / count
    var = jnp.maximum(total_sq / count - mean * mean, 0.0)   # biased (training-mode) var
    scale = gamma_p * jax.lax.rsqrt(var + BN_EPS)
    shift = beta_p - mean * scale
    return scale.reshape(1, -1), shift.reshape(1, -1)


def transformer_encoder_block(x, P, nheads):
    """x: (L, N, E) -> (L, N, E), matching the PyTorch module (training-mode BN)."""
    L, N, E = x.shape
    D = P['w_out'].shape[0]
    H = nheads
    assert D % H == 0
    hd = D // H
    assert L % 8 == 0, "this kernel assumes seq_len is a multiple of 8"
    M = N * L

    # Lane-dense padded sizes.
    Ep = _round_up(E, 128)
    Dp = _round_up(D, 128)
    hdp = _round_up(hd, 128)
    HDp = H * hdp
    F4p = _round_up(4 * E, 128)

    # Sequences per grid block: target >=128 token rows per block when N allows.
    TB = math.gcd(N, max(1, 128 // L))
    n_blocks = N // TB
    BR = TB * L

    bf16 = jnp.bfloat16

    # ---- one-time weight packing (zero-pad to lane multiples, bf16 weights) ----
    wqkv = jnp.concatenate(
        [_pad_matrix(P['w_qkv'][:, i * D:(i + 1) * D], Ep, Dp) for i in range(3)],
        axis=1).astype(bf16)
    bqkv = jnp.concatenate(
        [_pad_row(P['b_qkv'][i * D:(i + 1) * D], Dp) for i in range(3)], axis=1)

    def pack_inproj(w):              # (D, D) -> (Dp, H*hdp), head-blocked columns
        w3 = jnp.pad(w.reshape(D, H, hd), ((0, Dp - D), (0, 0), (0, hdp - hd)))
        return w3.reshape(Dp, HDp).astype(bf16)

    def pack_inproj_bias(b):         # (D,) -> (1, H*hdp)
        return jnp.pad(b.reshape(H, hd), ((0, 0), (0, hdp - hd))).reshape(1, HDp)

    wqi, wki, wvi = (pack_inproj(P['wq_in']), pack_inproj(P['wk_in']),
                     pack_inproj(P['wv_in']))
    bqi, bki, bvi = (pack_inproj_bias(P['bq_in']), pack_inproj_bias(P['bk_in']),
                     pack_inproj_bias(P['bv_in']))

    wo = jnp.pad(P['w_out'].reshape(H, hd, D),
                 ((0, 0), (0, hdp - hd), (0, Dp - D))).reshape(HDp, Dp).astype(bf16)
    bo = _pad_row(P['b_out'], Dp)

    waf = _pad_matrix(P['w_af'], Dp, Ep).astype(bf16)
    baf = _pad_row(P['b_af'], Ep)
    wf1 = _pad_matrix(P['w_f1'], Ep, F4p).astype(bf16)
    bf1 = _pad_row(P['b_f1'], F4p)
    wf2 = _pad_matrix(P['w_f2'], F4p, Ep).astype(bf16)
    bf2 = _pad_row(P['b_f2'], Ep)

    pad = Ep - E
    g1 = jnp.concatenate([P['g1'], jnp.ones((pad,), jnp.float32)])
    b1 = jnp.concatenate([P['be1'], jnp.zeros((pad,), jnp.float32)])
    g2 = jnp.concatenate([P['g2'], jnp.ones((pad,), jnp.float32)])
    b2 = jnp.concatenate([P['be2'], jnp.zeros((pad,), jnp.float32)])

    # Batch-major lane-padded token matrix (one cheap transpose + pad).
    xk = _pad_matrix(jnp.transpose(x, (1, 0, 2)).reshape(M, E), M, Ep)

    seq_spec = pl.BlockSpec((BR, Ep), lambda i: (i, 0))
    stat_spec = pl.BlockSpec((8, Ep), lambda i: (i, 0))

    def full_spec(a):
        return pl.BlockSpec(a.shape, lambda i: (0,) * a.ndim)

    cparams = pltpu.CompilerParams(
        dimension_semantics=("parallel",),           # megacore / v7x 2-TC sharding
        vmem_limit_bytes=32 * 1024 * 1024)           # safe on v5e/v6e/v7x
    grid = (n_blocks,)

    # ---- pass 1: QKV + MHA + attn1_to_fcn + residual, BN1 partial stats ----
    attn_inputs = (xk, wqkv, bqkv, wqi, wki, wvi, bqi, bki, bvi, wo, bo, waf, baf)
    y1, stats1 = pl.pallas_call(
        functools.partial(_attn_kernel, nheads=H, seqs=TB, seq_len=L,
                          d_pad=Dp, head_pad=hdp, inv_sqrt_hd=float(hd) ** -0.5),
        grid=grid,
        in_specs=[seq_spec] + [full_spec(a) for a in attn_inputs[1:]],
        out_specs=(seq_spec, stat_spec),
        out_shape=(jax.ShapeDtypeStruct((M, Ep), jnp.float32),
                   jax.ShapeDtypeStruct((n_blocks * 8, Ep), jnp.float32)),
        compiler_params=cparams,
    )(*attn_inputs)

    sc1, sh1 = _finalize_bn(stats1, g1, b1, float(M))

    # ---- pass 2: norm1a (affine) + MLP + residual, BN2 partial stats ----
    mlp_inputs = (y1, sc1, sh1, wf1, bf1, wf2, bf2)
    y2, stats2 = pl.pallas_call(
        _mlp_kernel,
        grid=grid,
        in_specs=[seq_spec] + [full_spec(a) for a in mlp_inputs[1:]],
        out_specs=(seq_spec, stat_spec),
        out_shape=(jax.ShapeDtypeStruct((M, Ep), jnp.float32),
                   jax.ShapeDtypeStruct((n_blocks * 8, Ep), jnp.float32)),
        compiler_params=cparams,
    )(*mlp_inputs)

    sc2, sh2 = _finalize_bn(stats2, g2, b2, float(M))

    # ---- pass 3: norm1b (affine) ----
    out = pl.pallas_call(
        _norm_kernel,
        grid=grid,
        in_specs=[seq_spec, full_spec(sc2), full_spec(sh2)],
        out_specs=seq_spec,
        out_shape=jax.ShapeDtypeStruct((M, Ep), jnp.float32),
        compiler_params=cparams,
    )(y2, sc2, sh2)

    return out[:, :E].reshape(N, L, E).transpose(1, 0, 2)


# --------------------------- params & reference -------------------------------


def init_params(key, trans_emb_dim, transformer_dim, nheads):
    E, D = trans_emb_dim, transformer_dim
    keys = jax.random.split(key, 12)

    def lin(k, fan_in, fan_out):
        kw, kb = jax.random.split(k)
        lim = 1.0 / np.sqrt(fan_in)
        w = jax.random.uniform(kw, (fan_in, fan_out), jnp.float32, -lim, lim)
        b = jax.random.uniform(kb, (fan_out,), jnp.float32, -lim, lim)
        return w, b

    P = {}
    P['w_qkv'], P['b_qkv'] = lin(keys[0], E, 3 * D)
    P['wq_in'], P['bq_in'] = lin(keys[1], D, D)
    P['wk_in'], P['bk_in'] = lin(keys[2], D, D)
    P['wv_in'], P['bv_in'] = lin(keys[3], D, D)
    P['w_out'], P['b_out'] = lin(keys[4], D, D)
    P['w_af'], P['b_af'] = lin(keys[5], D, E)
    P['w_f1'], P['b_f1'] = lin(keys[6], E, 4 * E)
    P['w_f2'], P['b_f2'] = lin(keys[7], 4 * E, E)
    P['g1'] = 1.0 + 0.1 * jax.random.normal(keys[8], (E,), jnp.float32)
    P['be1'] = 0.1 * jax.random.normal(keys[9], (E,), jnp.float32)
    P['g2'] = 1.0 + 0.1 * jax.random.normal(keys[10], (E,), jnp.float32)
    P['be2'] = 0.1 * jax.random.normal(keys[11], (E,), jnp.float32)
    return P


def reference_forward(x, P, nheads):
    """Pure-JAX reference mirroring the PyTorch forward (training mode)."""
    L, N, E = x.shape
    D = P['w_out'].shape[0]
    H = nheads
    hd = D // H
    hp = dict(precision=jax.lax.Precision.HIGHEST)

    qkv = jnp.einsum('lne,ef->lnf', x, P['w_qkv'], **hp) + P['b_qkv']
    q, k, v = qkv[..., :D], qkv[..., D:2 * D], qkv[..., 2 * D:]
    q = jnp.einsum('lnd,df->lnf', q, P['wq_in'], **hp) + P['bq_in']
    k = jnp.einsum('lnd,df->lnf', k, P['wk_in'], **hp) + P['bk_in']
    v = jnp.einsum('lnd,df->lnf', v, P['wv_in'], **hp) + P['bv_in']

    def heads(t):
        return t.reshape(L, N, H, hd).transpose(1, 2, 0, 3)   # (N, H, L, hd)

    qh, kh, vh = heads(q) * (hd ** -0.5), heads(k), heads(v)
    s = jnp.einsum('nhld,nhmd->nhlm', qh, kh, **hp)
    p = jax.nn.softmax(s, axis=-1)
    o = jnp.einsum('nhlm,nhmd->nhld', p, vh, **hp)
    o = o.transpose(2, 0, 1, 3).reshape(L, N, D)
    o = jnp.einsum('lnd,df->lnf', o, P['w_out'], **hp) + P['b_out']

    a = jnp.einsum('lnd,de->lne', o, P['w_af'], **hp) + P['b_af']
    b = a / 1.414 + x / 1.414

    def bn(t, g, be):
        flat = t.reshape(L * N, E)
        m = flat.mean(0)
        var = ((flat - m) ** 2).mean(0)
        return (t - m) * jax.lax.rsqrt(var + BN_EPS) * g + be

    b = bn(b, P['g1'], P['be1'])
    h1 = jax.nn.gelu(jnp.einsum('lne,ef->lnf', b, P['w_f1'], **hp) + P['b_f1'],
                     approximate=False)
    f = jnp.einsum('lnf,fe->lne', h1, P['w_f2'], **hp) + P['b_f2']
    c = f / 1.414 + b / 1.414
    return bn(c, P['g2'], P['be2'])


if __name__ == "__main__":
    trans_emb_dim, transformer_dim, nheads = 16, 32, 4
    seq_len, batch = 8, 2

    key = jax.random.PRNGKey(0)
    kx, kp = jax.random.split(key)
    x = jax.random.normal(kx, (seq_len, batch, trans_emb_dim), jnp.float32)
    P = init_params(kp, trans_emb_dim, transformer_dim, nheads)

    fwd = jax.jit(functools.partial(transformer_encoder_block, nheads=nheads))
    out = jax.block_until_ready(fwd(x, P))

    ref = reference_forward(x, P, nheads)
    assert out.shape == (seq_len, batch, trans_emb_dim)
    # bf16 MXU inputs (f32 accumulation) => slightly looser tolerance than pure f32.
    np.testing.assert_allclose(np.asarray(out), np.asarray(ref), atol=5e-2, rtol=5e-2)
    print("KERNEL_OK")
</pallas_src>

<mosaic_0001>
module attributes {stable_mosaic.version = 11 : i64} {
  func.func @_norm_kernel(%arg0: i32, %arg1: memref<16x128xf32, #tpu.memory_space<vmem>>, %arg2: memref<1x128xf32, #tpu.memory_space<vmem>>, %arg3: memref<1x128xf32, #tpu.memory_space<vmem>>, %arg4: memref<16x128xf32, #tpu.memory_space<vmem>>) attributes {dimension_semantics = [#tpu.dimension_semantics<parallel>], iteration_bounds = array<i64: 1>, scalar_prefetch = 0 : i64, scratch_operands = 0 : i64, tpu.core_type = #tpu.core_type<tc>, window_params = [{transform_indices = @transform_0, window_bounds = array<i64: 16, 128>}, {pipeline_mode = #tpu.pipeline_mode<synchronous>, transform_indices = @transform_1, window_bounds = array<i64: 1, 128>}, {pipeline_mode = #tpu.pipeline_mode<synchronous>, transform_indices = @transform_2, window_bounds = array<i64: 1, 128>}, {transform_indices = @transform_3, window_bounds = array<i64: 16, 128>}]} {
    %c0 = arith.constant 0 : index
    %c0_0 = arith.constant 0 : index
    %0 = vector.load %arg1[%c0, %c0_0] : memref<16x128xf32, #tpu.memory_space<vmem>>, vector<16x128xf32>
    %c0_1 = arith.constant 0 : index
    %c0_2 = arith.constant 0 : index
    %1 = vector.load %arg2[%c0_1, %c0_2] : memref<1x128xf32, #tpu.memory_space<vmem>>, vector<1x128xf32>
    %2 = vector.broadcast %1 : vector<1x128xf32> to vector<16x128xf32>
    %3 = arith.mulf %0, %2 : vector<16x128xf32>
    %c0_3 = arith.constant 0 : index
    %c0_4 = arith.constant 0 : index
    %4 = vector.load %arg3[%c0_3, %c0_4] : memref<1x128xf32, #tpu.memory_space<vmem>>, vector<1x128xf32>
    %5 = vector.broadcast %4 : vector<1x128xf32> to vector<16x128xf32>
    %6 = arith.addf %3, %5 : vector<16x128xf32>
    %c0_5 = arith.constant 0 : index
    %c0_6 = arith.constant 0 : index
    %7 = vector.load %arg4[%c0_5, %c0_6] : memref<16x128xf32, #tpu.memory_space<vmem>>, vector<16x128xf32>
    tpu.vector_store %arg4[%c0_5, %c0_6], %6 {strides = array<i32>} : memref<16x128xf32, #tpu.memory_space<vmem>>, vector<16x128xf32>,
    return
  }
  func.func @transform_0(%arg0: i32) -> (i32, i32) {
    %c0_i32 = arith.constant 0 : i32
    %c0_i32_0 = arith.constant 0 : i32
    return %arg0, %c0_i32 : i32, i32
  }
  func.func @transform_1(%arg0: i32) -> (i32, i32) {
    %c0_i32 = arith.constant 0 : i32
    %c0_i32_0 = arith.constant 0 : i32
    %c0_i32_1 = arith.constant 0 : i32
    return %c0_i32, %c0_i32_0 : i32, i32
  }
  func.func @transform_2(%arg0: i32) -> (i32, i32) {
    %c0_i32 = arith.constant 0 : i32
    %c0_i32_0 = arith.constant 0 : i32
    %c0_i32_1 = arith.constant 0 : i32
    return %c0_i32, %c0_i32_0 : i32, i32
  }
  func.func @transform_3(%arg0: i32) -> (i32, i32) {
    %c0_i32 = arith.constant 0 : i32
    %c0_i32_0 = arith.constant 0 : i32
    return %arg0, %c0_i32 : i32, i32
  }
}

module attributes {stable_mosaic.version = 11 : i64} {
  func.func @_attn_kernel(%arg0: i32, %arg1: memref<16x128xf32, #tpu.memory_space<vmem>>, %arg2: memref<128x384xbf16, #tpu.memory_space<vmem>>, %arg3: memref<1x384xf32, #tpu.memory_space<vmem>>, %arg4: memref<128x512xbf16, #tpu.memory_space<vmem>>, %arg5: memref<128x512xbf16, #tpu.memory_space<vmem>>, %arg6: memref<128x512xbf16, #tpu.memory_space<vmem>>, %arg7: memref<1x512xf32, #tpu.memory_space<vmem>>, %arg8: memref<1x512xf32, #tpu.memory_space<vmem>>, %arg9: memref<1x512xf32, #tpu.memory_space<vmem>>, %arg10: memref<512x128xbf16, #tpu.memory_space<vmem>>, %arg11: memref<1x128xf32, #tpu.memory_space<vmem>>, %arg12: memref<128x128xbf16, #tpu.memory_space<vmem>>, %arg13: memref<1x128xf32, #tpu.memory_space<vmem>>, %arg14: memref<16x128xf32, #tpu.memory_space<vmem>>, %arg15: memref<8x128xf32, #tpu.memory_space<vmem>>) attributes {dimension_semantics = [#tpu.dimension_semantics<parallel>], iteration_bounds = array<i64: 1>, scalar_prefetch = 0 : i64, scratch_operands = 0 : i64, tpu.core_type = #tpu.core_type<tc>, window_params = [{transform_indices = @transform_0, window_bounds = array<i64: 16, 128>}, {pipeline_mode = #tpu.pipeline_mode<synchronous>, transform_indices = @transform_1, window_bounds = array<i64: 128, 384>}, {pipeline_mode = #tpu.pipeline_mode<synchronous>, transform_indices = @transform_2, window_bounds = array<i64: 1, 384>}, {pipeline_mode = #tpu.pipeline_mode<synchronous>, transform_indices = @transform_3, window_bounds = array<i64: 128, 512>}, {pipeline_mode = #tpu.pipeline_mode<synchronous>, transform_indices = @transform_4, window_bounds = array<i64: 128, 512>}, {pipeline_mode = #tpu.pipeline_mode<synchronous>, transform_indices = @transform_5, window_bounds = array<i64: 128, 512>}, {pipeline_mode = #tpu.pipeline_mode<synchronous>, transform_indices = @transform_6, window_bounds = array<i64: 1, 512>}, {pipeline_mode = #tpu.pipeline_mode<synchronous>, transform_indices = @transform_7, window_bounds = array<i64: 1, 512>}, {pipeline_mode = #tpu.pipeline_mode<synchronous>, transform_indices = @transform_8, window_bounds = array<i64: 1, 512>}, {pipeline_mode = #tpu.pipeline_mode<synchronous>, transform_indices = @transform_9, window_bounds = array<i64: 512, 128>}, {pipeline_mode = #tpu.pipeline_mode<synchronous>, transform_indices = @transform_10, window_bounds = array<i64: 1, 128>}, {pipeline_mode = #tpu.pipeline_mode<synchronous>, transform_indices = @transform_11, window_bounds = array<i64: 128, 128>}, {pipeline_mode = #tpu.pipeline_mode<synchronous>, transform_indices = @transform_12, window_bounds = array<i64: 1, 128>}, {transform_indices = @transform_13, window_bounds = array<i64: 16, 128>}, {transform_indices = @transform_14, window_bounds = array<i64: 8, 128>}]} {
    %c0 = arith.constant 0 : index
    %c0_0 = arith.constant 0 : index
    %0 = vector.load %arg1[%c0, %c0_0] : memref<16x128xf32, #tpu.memory_space<vmem>>, vector<16x128xf32>
    %1 = arith.truncf %0 : vector<16x128xf32> to vector<16x128xbf16>
    %c0_1 = arith.constant 0 : index
    %c0_2 = arith.constant 0 : index
    %2 = vector.load %arg2[%c0_1, %c0_2] : memref<128x384xbf16, #tpu.memory_space<vmem>>, vector<128x384xbf16>
    %cst = arith.constant dense<0.000000e+00> : vector<16x384xf32>
    %3 = tpu.matmul %1, %2, %cst {dimension_numbers = #tpu.dot_dimension_numbers<[1], [0], [0], [1], [0, 0, 1, 1], [], []>} : vector<16x128xbf16>, vector<128x384xbf16>, vector<16x384xf32> -> vector<16x384xf32>
    %c0_3 = arith.constant 0 : index
    %c0_4 = arith.constant 0 : index
    %4 = vector.load %arg3[%c0_3, %c0_4] : memref<1x384xf32, #tpu.memory_space<vmem>>, vector<1x384xf32>
    %5 = vector.broadcast %4 : vector<1x384xf32> to vector<16x384xf32>
    %6 = arith.addf %3, %5 : vector<16x384xf32>
    %7 = vector.extract_strided_slice %6 {offsets = [0, 0], sizes = [16, 128], strides = [1, 1]} : vector<16x384xf32> to vector<16x128xf32>
    %8 = arith.truncf %7 : vector<16x128xf32> to vector<16x128xbf16>
    %9 = vector.extract_strided_slice %6 {offsets = [0, 128], sizes = [16, 128], strides = [1, 1]} : vector<16x384xf32> to vector<16x128xf32>
    %10 = arith.truncf %9 : vector<16x128xf32> to vector<16x128xbf16>
    %11 = vector.extract_strided_slice %6 {offsets = [0, 256], sizes = [16, 128], strides = [1, 1]} : vector<16x384xf32> to vector<16x128xf32>
    %12 = arith.truncf %11 : vector<16x128xf32> to vector<16x128xbf16>
    %c0_5 = arith.constant 0 : index
    %c0_6 = arith.constant 0 : index
    %13 = vector.load %arg4[%c0_5, %c0_6] : memref<128x512xbf16, #tpu.memory_space<vmem>>, vector<128x512xbf16>
    %cst_7 = arith.constant dense<0.000000e+00> : vector<16x512xf32>
    %14 = tpu.matmul %8, %13, %cst_7 {dimension_numbers = #tpu.dot_dimension_numbers<[1], [0], [0], [1], [0, 0, 1, 1], [], []>} : vector<16x128xbf16>, vector<128x512xbf16>, vector<16x512xf32> -> vector<16x512xf32>
    %c0_8 = arith.constant 0 : index
    %c0_9 = arith.constant 0 : index
    %15 = vector.load %arg7[%c0_8, %c0_9] : memref<1x512xf32, #tpu.memory_space<vmem>>, vector<1x512xf32>
    %16 = vector.broadcast %15 : vector<1x512xf32> to vector<16x512xf32>
    %17 = arith.addf %14, %16 : vector<16x512xf32>
    %c0_10 = arith.constant 0 : index
    %c0_11 = arith.constant 0 : index
    %18 = vector.load %arg5[%c0_10, %c0_11] : memref<128x512xbf16, #tpu.memory_space<vmem>>, vector<128x512xbf16>
    %cst_12 = arith.constant dense<0.000000e+00> : vector<16x512xf32>
    %19 = tpu.matmul %10, %18, %cst_12 {dimension_numbers = #tpu.dot_dimension_numbers<[1], [0], [0], [1], [0, 0, 1, 1], [], []>} : vector<16x128xbf16>, vector<128x512xbf16>, vector<16x512xf32> -> vector<16x512xf32>
    %c0_13 = arith.constant 0 : index
    %c0_14 = arith.constant 0 : index
    %20 = vector.load %arg8[%c0_13, %c0_14] : memref<1x512xf32, #tpu.memory_space<vmem>>, vector<1x512xf32>
    %21 = vector.broadcast %20 : vector<1x512xf32> to vector<16x512xf32>
    %22 = arith.addf %19, %21 : vector<16x512xf32>
    %c0_15 = arith.constant 0 : index
    %c0_16 = arith.constant 0 : index
    %23 = vector.load %arg6[%c0_15, %c0_16] : memref<128x512xbf16, #tpu.memory_space<vmem>>, vector<128x512xbf16>
    %cst_17 = arith.constant dense<0.000000e+00> : vector<16x512xf32>
    %24 = tpu.matmul %12, %23, %cst_17 {dimension_numbers = #tpu.dot_dimension_numbers<[1], [0], [0], [1], [0, 0, 1, 1], [], []>} : vector<16x128xbf16>, vector<128x512xbf16>, vector<16x512xf32> -> vector<16x512xf32>
    %c0_18 = arith.constant 0 : index
    %c0_19 = arith.constant 0 : index
    %25 = vector.load %arg9[%c0_18, %c0_19] : memref<1x512xf32, #tpu.memory_space<vmem>>, vector<1x512xf32>
    %26 = vector.broadcast %25 : vector<1x512xf32> to vector<16x512xf32>
    %27 = arith.addf %24, %26 : vector<16x512xf32>
    %28 = vector.extract_strided_slice %17 {offsets = [0, 0], sizes = [8, 128], strides = [1, 1]} : vector<16x512xf32> to vector<8x128xf32>
    %29 = arith.truncf %28 : vector<8x128xf32> to vector<8x128xbf16>
    %30 = vector.extract_strided_slice %22 {offsets = [0, 0], sizes = [8, 128], strides = [1, 1]} : vector<16x512xf32> to vector<8x128xf32>
    %31 = arith.truncf %30 : vector<8x128xf32> to vector<8x128xbf16>
    %32 = vector.extract_strided_slice %27 {offsets = [0, 0], sizes = [8, 128], strides = [1, 1]} : vector<16x512xf32> to vector<8x128xf32>
    %33 = arith.truncf %32 : vector<8x128xf32> to vector<8x128xbf16>
    %cst_20 = arith.constant dense<0.000000e+00> : vector<8x8xf32>
    %34 = tpu.matmul %29, %31, %cst_20 {dimension_numbers = #tpu.dot_dimension_numbers<[1], [1], [0], [0], [0, 0, 1, 0], [], []>} : vector<8x128xbf16>, vector<8x128xbf16>, vector<8x8xf32> -> vector<8x8xf32>
    %cst_21 = arith.constant 0.353553385 : f32
    %35 = vector.broadcast %cst_21 : f32 to vector<8x8xf32>
    %36 = arith.mulf %34, %35 : vector<8x8xf32>
    %cst_22 = arith.constant dense<0xFF800000> : vector<8xf32>
    %37 = vector.multi_reduction <maximumf>, %36, %cst_22 [1] : vector<8x8xf32> to vector<8xf32>
    %38 = vector.shape_cast %37 : vector<8xf32> to vector<8x1xf32>
    %39 = vector.broadcast %38 : vector<8x1xf32> to vector<8x8xf32>
    %40 = arith.subf %36, %39 : vector<8x8xf32>
    %41 = math.exp %40 : vector<8x8xf32>
    %cst_23 = arith.constant dense<0.000000e+00> : vector<8xf32>
    %42 = vector.multi_reduction <add>, %41, %cst_23 [1] : vector<8x8xf32> to vector<8xf32>
    %43 = vector.shape_cast %42 : vector<8xf32> to vector<8x1xf32>
    %44 = tpu.reciprocal %43 {approx = true} : vector<8x1xf32> -> vector<8x1xf32>
    %45 = vector.broadcast %44 : vector<8x1xf32> to vector<8x8xf32>
    %46 = arith.mulf %41, %45 : vector<8x8xf32>
    %47 = arith.truncf %46 : vector<8x8xf32> to vector<8x8xbf16>
    %cst_24 = arith.constant dense<0.000000e+00> : vector<8x128xf32>
    %48 = tpu.matmul %47, %33, %cst_24 {dimension_numbers = #tpu.dot_dimension_numbers<[1], [0], [0], [1], [0, 0, 1, 1], [], []>} : vector<8x8xbf16>, vector<8x128xbf16>, vector<8x128xf32> -> vector<8x128xf32>
    %49 = vector.extract_strided_slice %17 {offsets = [0, 128], sizes = [8, 128], strides = [1, 1]} : vector<16x512xf32> to vector<8x128xf32>
    %50 = arith.truncf %49 : vector<8x128xf32> to vector<8x128xbf16>
    %51 = vector.extract_strided_slice %22 {offsets = [0, 128], sizes = [8, 128], strides = [1, 1]} : vector<16x512xf32> to vector<8x128xf32>
    %52 = arith.truncf %51 : vector<8x128xf32> to vector<8x128xbf16>
    %53 = vector.extract_strided_slice %27 {offsets = [0, 128], sizes = [8, 128], strides = [1, 1]} : vector<16x512xf32> to vector<8x128xf32>
    %54 = arith.truncf %53 : vector<8x128xf32> to vector<8x128xbf16>
    %cst_25 = arith.constant dense<0.000000e+00> : vector<8x8xf32>
    %55 = tpu.matmul %50, %52, %cst_25 {dimension_numbers = #tpu.dot_dimension_numbers<[1], [1], [0], [0], [0, 0, 1, 0], [], []>} : vector<8x128xbf16>, vector<8x128xbf16>, vector<8x8xf32> -> vector<8x8xf32>
    %cst_26 = arith.constant 0.353553385 : f32
    %56 = vector.broadcast %cst_26 : f32 to vector<8x8xf32>
    %57 = arith.mulf %55, %56 : vector<8x8xf32>
    %cst_27 = arith.constant dense<0xFF800000> : vector<8xf32>
    %58 = vector.multi_reduction <maximumf>, %57, %cst_27 [1] : vector<8x8xf32> to vector<8xf32>
    %59 = vector.shape_cast %58 : vector<8xf32> to vector<8x1xf32>
    %60 = vector.broadcast %59 : vector<8x1xf32> to vector<8x8xf32>
    %61 = arith.subf %57, %60 : vector<8x8xf32>
    %62 = math.exp %61 : vector<8x8xf32>
    %cst_28 = arith.constant dense<0.000000e+00> : vector<8xf32>
    %63 = vector.multi_reduction <add>, %62, %cst_28 [1] : vector<8x8xf32> to vector<8xf32>
    %64 = vector.shape_cast %63 : vector<8xf32> to vector<8x1xf32>
    %65 = tpu.reciprocal %64 {approx = true} : vector<8x1xf32> -> vector<8x1xf32>
    %66 = vector.broadcast %65 : vector<8x1xf32> to vector<8x8xf32>
    %67 = arith.mulf %62, %66 : vector<8x8xf32>
    %68 = arith.truncf %67 : vector<8x8xf32> to vector<8x8xbf16>
    %cst_29 = arith.constant dense<0.000000e+00> : vector<8x128xf32>
    %69 = tpu.matmul %68, %54, %cst_29 {dimension_numbers = #tpu.dot_dimension_numbers<[1], [0], [0], [1], [0, 0, 1, 1], [], []>} : vector<8x8xbf16>, vector<8x128xbf16>, vector<8x128xf32> -> vector<8x128xf32>
    %70 = vector.extract_strided_slice %17 {offsets = [0, 256], sizes = [8, 128], strides = [1, 1]} : vector<16x512xf32> to vector<8x128xf32>
    %71 = arith.truncf %70 : vector<8x128xf32> to vector<8x128xbf16>
    %72 = vector.extract_strided_slice %22 {offsets = [0, 256], sizes = [8, 128], strides = [1, 1]} : vector<16x512xf32> to vector<8x128xf32>
    %73 = arith.truncf %72 : vector<8x128xf32> to vector<8x128xbf16>
    %74 = vector.extract_strided_slice %27 {offsets = [0, 256], sizes = [8, 128], strides = [1, 1]} : vector<16x512xf32> to vector<8x128xf32>
    %75 = arith.truncf %74 : vector<8x128xf32> to vector<8x128xbf16>
    %cst_30 = arith.constant dense<0.000000e+00> : vector<8x8xf32>
    %76 = tpu.matmul %71, %73, %cst_30 {dimension_numbers = #tpu.dot_dimension_numbers<[1], [1], [0], [0], [0, 0, 1, 0], [], []>} : vector<8x128xbf16>, vector<8x128xbf16>, vector<8x8xf32> -> vector<8x8xf32>
    %cst_31 = arith.constant 0.353553385 : f32
    %77 = vector.broadcast %cst_31 : f32 to vector<8x8xf32>
    %78 = arith.mulf %76, %77 : vector<8x8xf32>
    %cst_32 = arith.constant dense<0xFF800000> : vector<8xf32>
    %79 = vector.multi_reduction <maximumf>, %78, %cst_32 [1] : vector<8x8xf32> to vector<8xf32>
    %80 = vector.shape_cast %79 : vector<8xf32> to vector<8x1xf32>
    %81 = vector.broadcast %80 : vector<8x1xf32> to vector<8x8xf32>
    %82 = arith.subf %78, %81 : vector<8x8xf32>
    %83 = math.exp %82 : vector<8x8xf32>
    %cst_33 = arith.constant dense<0.000000e+00> : vector<8xf32>
    %84 = vector.multi_reduction <add>, %83, %cst_33 [1] : vector<8x8xf32> to vector<8xf32>
    %85 = vector.shape_cast %84 : vector<8xf32> to vector<8x1xf32>
    %86 = tpu.reciprocal %85 {approx = true} : vector<8x1xf32> -> vector<8x1xf32>
    %87 = vector.broadcast %86 : vector<8x1xf32> to vector<8x8xf32>
    %88 = arith.mulf %83, %87 : vector<8x8xf32>
    %89 = arith.truncf %88 : vector<8x8xf32> to vector<8x8xbf16>
    %cst_34 = arith.constant dense<0.000000e+00> : vector<8x128xf32>
    %90 = tpu.matmul %89, %75, %cst_34 {dimension_numbers = #tpu.dot_dimension_numbers<[1], [0], [0], [1], [0, 0, 1, 1], [], []>} : vector<8x8xbf16>, vector<8x128xbf16>, vector<8x128xf32> -> vector<8x128xf32>
    %91 = vector.extract_strided_slice %17 {offsets = [0, 384], sizes = [8, 128], strides = [1, 1]} : vector<16x512xf32> to vector<8x128xf32>
    %92 = arith.truncf %91 : vector<8x128xf32> to vector<8x128xbf16>
    %93 = vector.extract_strided_slice %22 {offsets = [0, 384], sizes = [8, 128], strides = [1, 1]} : vector<16x512xf32> to vector<8x128xf32>
    %94 = arith.truncf %93 : vector<8x128xf32> to vector<8x128xbf16>
    %95 = vector.extract_strided_slice %27 {offsets = [0, 384], sizes = [8, 128], strides = [1, 1]} : vector<16x512xf32> to vector<8x128xf32>
    %96 = arith.truncf %95 : vector<8x128xf32> to vector<8x128xbf16>
    %cst_35 = arith.constant dense<0.000000e+00> : vector<8x8xf32>
    %97 = tpu.matmul %92, %94, %cst_35 {dimension_numbers = #tpu.dot_dimension_numbers<[1], [1], [0], [0], [0, 0, 1, 0], [], []>} : vector<8x128xbf16>, vector<8x128xbf16>, vector<8x8xf32> -> vector<8x8xf32>
    %cst_36 = arith.constant 0.353553385 : f32
    %98 = vector.broadcast %cst_36 : f32 to vector<8x8xf32>
    %99 = arith.mulf %97, %98 : vector<8x8xf32>
    %cst_37 = arith.constant dense<0xFF800000> : vector<8xf32>
    %100 = vector.multi_reduction <maximumf>, %99, %cst_37 [1] : vector<8x8xf32> to vector<8xf32>
    %101 = vector.shape_cast %100 : vector<8xf32> to vector<8x1xf32>
    %102 = vector.broadcast %101 : vector<8x1xf32> to vector<8x8xf32>
    %103 = arith.subf %99, %102 : vector<8x8xf32>
    %104 = math.exp %103 : vector<8x8xf32>
    %cst_38 = arith.constant dense<0.000000e+00> : vector<8xf32>
    %105 = vector.multi_reduction <add>, %104, %cst_38 [1] : vector<8x8xf32> to vector<8xf32>
    %106 = vector.shape_cast %105 : vector<8xf32> to vector<8x1xf32>
    %107 = tpu.reciprocal %106 {approx = true} : vector<8x1xf32> -> vector<8x1xf32>
    %108 = vector.broadcast %107 : vector<8x1xf32> to vector<8x8xf32>
    %109 = arith.mulf %104, %108 : vector<8x8xf32>
    %110 = arith.truncf %109 : vector<8x8xf32> to vector<8x8xbf16>
    %cst_39 = arith.constant dense<0.000000e+00> : vector<8x128xf32>
    %111 = tpu.matmul %110, %96, %cst_39 {dimension_numbers = #tpu.dot_dimension_numbers<[1], [0], [0], [1], [0, 0, 1, 1], [], []>} : vector<8x8xbf16>, vector<8x128xbf16>, vector<8x128xf32> -> vector<8x128xf32>
    %112 = tpu.concatenate %48, %69, %90, %111 in 1 : vector<8x128xf32>, vector<8x128xf32>, vector<8x128xf32>, vector<8x128xf32> -> vector<8x512xf32>
    %113 = vector.extract_strided_slice %17 {offsets = [8, 0], sizes = [8, 128], strides = [1, 1]} : vector<16x512xf32> to vector<8x128xf32>
    %114 = arith.truncf %113 : vector<8x128xf32> to vector<8x128xbf16>
    %115 = vector.extract_strided_slice %22 {offsets = [8, 0], sizes = [8, 128], strides = [1, 1]} : vector<16x512xf32> to vector<8x128xf32>
    %116 = arith.truncf %115 : vector<8x128xf32> to vector<8x128xbf16>
    %117 = vector.extract_strided_slice %27 {offsets = [8, 0], sizes = [8, 128], strides = [1, 1]} : vector<16x512xf32> to vector<8x128xf32>
    %118 = arith.truncf %117 : vector<8x128xf32> to vector<8x128xbf16>
    %cst_40 = arith.constant dense<0.000000e+00> : vector<8x8xf32>
    %119 = tpu.matmul %114, %116, %cst_40 {dimension_numbers = #tpu.dot_dimension_numbers<[1], [1], [0], [0], [0, 0, 1, 0], [], []>} : vector<8x128xbf16>, vector<8x128xbf16>, vector<8x8xf32> -> vector<8x8xf32>
    %cst_41 = arith.constant 0.353553385 : f32
    %120 = vector.broadcast %cst_41 : f32 to vector<8x8xf32>
    %121 = arith.mulf %119, %120 : vector<8x8xf32>
    %cst_42 = arith.constant dense<0xFF800000> : vector<8xf32>
    %122 = vector.multi_reduction <maximumf>, %121, %cst_42 [1] : vector<8x8xf32> to vector<8xf32>
    %123 = vector.shape_cast %122 : vector<8xf32> to vector<8x1xf32>
    %124 = vector.broadcast %123 : vector<8x1xf32> to vector<8x8xf32>
    %125 = arith.subf %121, %124 : vector<8x8xf32>
    %126 = math.exp %125 : vector<8x8xf32>
    %cst_43 = arith.constant dense<0.000000e+00> : vector<8xf32>
    %127 = vector.multi_reduction <add>, %126, %cst_43 [1] : vector<8x8xf32> to vector<8xf32>
    %128 = vector.shape_cast %127 : vector<8xf32> to vector<8x1xf32>
    %129 = tpu.reciprocal %128 {approx = true} : vector<8x1xf32> -> vector<8x1xf32>
    %130 = vector.broadcast %129 : vector<8x1xf32> to vector<8x8xf32>
    %131 = arith.mulf %126, %130 : vector<8x8xf32>
    %132 = arith.truncf %131 : vector<8x8xf32> to vector<8x8xbf16>
    %cst_44 = arith.constant dense<0.000000e+00> : vector<8x128xf32>
    %133 = tpu.matmul %132, %118, %cst_44 {dimension_numbers = #tpu.dot_dimension_numbers<[1], [0], [0], [1], [0, 0, 1, 1], [], []>} : vector<8x8xbf16>, vector<8x128xbf16>, vector<8x128xf32> -> vector<8x128xf32>
    %134 = vector.extract_strided_slice %17 {offsets = [8, 128], sizes = [8, 128], strides = [1, 1]} : vector<16x512xf32> to vector<8x128xf32>
    %135 = arith.truncf %134 : vector<8x128xf32> to vector<8x128xbf16>
    %136 = vector.extract_strided_slice %22 {offsets = [8, 128], sizes = [8, 128], strides = [1, 1]} : vector<16x512xf32> to vector<8x128xf32>
    %137 = arith.truncf %136 : vector<8x128xf32> to vector<8x128xbf16>
    %138 = vector.extract_strided_slice %27 {offsets = [8, 128], sizes = [8, 128], strides = [1, 1]} : vector<16x512xf32> to vector<8x128xf32>
    %139 = arith.truncf %138 : vector<8x128xf32> to vector<8x128xbf16>
    %cst_45 = arith.constant dense<0.000000e+00> : vector<8x8xf32>
    %140 = tpu.matmul %135, %137, %cst_45 {dimension_numbers = #tpu.dot_dimension_numbers<[1], [1], [0], [0], [0, 0, 1, 0], [], []>} : vector<8x128xbf16>, vector<8x128xbf16>, vector<8x8xf32> -> vector<8x8xf32>
    %cst_46 = arith.constant 0.353553385 : f32
    %141 = vector.broadcast %cst_46 : f32 to vector<8x8xf32>
    %142 = arith.mulf %140, %141 : vector<8x8xf32>
    %cst_47 = arith.constant dense<0xFF800000> : vector<8xf32>
    %143 = vector.multi_reduction <maximumf>, %142, %cst_47 [1] : vector<8x8xf32> to vector<8xf32>
    %144 = vector.shape_cast %143 : vector<8xf32> to vector<8x1xf32>
    %145 = vector.broadcast %144 : vector<8x1xf32> to vector<8x8xf32>
    %146 = arith.subf %142, %145 : vector<8x8xf32>
    %147 = math.exp %146 : vector<8x8xf32>
    %cst_48 = arith.constant dense<0.000000e+00> : vector<8xf32>
    %148 = vector.multi_reduction <add>, %147, %cst_48 [1] : vector<8x8xf32> to vector<8xf32>
    %149 = vector.shape_cast %148 : vector<8xf32> to vector<8x1xf32>
    %150 = tpu.reciprocal %149 {approx = true} : vector<8x1xf32> -> vector<8x1xf32>
    %151 = vector.broadcast %150 : vector<8x1xf32> to vector<8x8xf32>
    %152 = arith.mulf %147, %151 : vector<8x8xf32>
    %153 = arith.truncf %152 : vector<8x8xf32> to vector<8x8xbf16>
    %cst_49 = arith.constant dense<0.000000e+00> : vector<8x128xf32>
    %154 = tpu.matmul %153, %139, %cst_49 {dimension_numbers = #tpu.dot_dimension_numbers<[1], [0], [0], [1], [0, 0, 1, 1], [], []>} : vector<8x8xbf16>, vector<8x128xbf16>, vector<8x128xf32> -> vector<8x128xf32>
    %155 = vector.extract_strided_slice %17 {offsets = [8, 256], sizes = [8, 128], strides = [1, 1]} : vector<16x512xf32> to vector<8x128xf32>
    %156 = arith.truncf %155 : vector<8x128xf32> to vector<8x128xbf16>
    %157 = vector.extract_strided_slice %22 {offsets = [8, 256], sizes = [8, 128], strides = [1, 1]} : vector<16x512xf32> to vector<8x128xf32>
    %158 = arith.truncf %157 : vector<8x128xf32> to vector<8x128xbf16>
    %159 = vector.extract_strided_slice %27 {offsets = [8, 256], sizes = [8, 128], strides = [1, 1]} : vector<16x512xf32> to vector<8x128xf32>
    %160 = arith.truncf %159 : vector<8x128xf32> to vector<8x128xbf16>
    %cst_50 = arith.constant dense<0.000000e+00> : vector<8x8xf32>
    %161 = tpu.matmul %156, %158, %cst_50 {dimension_numbers = #tpu.dot_dimension_numbers<[1], [1], [0], [0], [0, 0, 1, 0], [], []>} : vector<8x128xbf16>, vector<8x128xbf16>, vector<8x8xf32> -> vector<8x8xf32>
    %cst_51 = arith.constant 0.353553385 : f32
    %162 = vector.broadcast %cst_51 : f32 to vector<8x8xf32>
    %163 = arith.mulf %161, %162 : vector<8x8xf32>
    %cst_52 = arith.constant dense<0xFF800000> : vector<8xf32>
    %164 = vector.multi_reduction <maximumf>, %163, %cst_52 [1] : vector<8x8xf32> to vector<8xf32>
    %165 = vector.shape_cast %164 : vector<8xf32> to vector<8x1xf32>
    %166 = vector.broadcast %165 : vector<8x1xf32> to vector<8x8xf32>
    %167 = arith.subf %163, %166 : vector<8x8xf32>
    %168 = math.exp %167 : vector<8x8xf32>
    %cst_53 = arith.constant dense<0.000000e+00> : vector<8xf32>
    %169 = vector.multi_reduction <add>, %168, %cst_53 [1] : vector<8x8xf32> to vector<8xf32>
    %170 = vector.shape_cast %169 : vector<8xf32> to vector<8x1xf32>
    %171 = tpu.reciprocal %170 {approx = true} : vector<8x1xf32> -> vector<8x1xf32>
    %172 = vector.broadcast %171 : vector<8x1xf32> to vector<8x8xf32>
    %173 = arith.mulf %168, %172 : vector<8x8xf32>
    %174 = arith.truncf %173 : vector<8x8xf32> to vector<8x8xbf16>
    %cst_54 = arith.constant dense<0.000000e+00> : vector<8x128xf32>
    %175 = tpu.matmul %174, %160, %cst_54 {dimension_numbers = #tpu.dot_dimension_numbers<[1], [0], [0], [1], [0, 0, 1, 1], [], []>} : vector<8x8xbf16>, vector<8x128xbf16>, vector<8x128xf32> -> vector<8x128xf32>
    %176 = vector.extract_strided_slice %17 {offsets = [8, 384], sizes = [8, 128], strides = [1, 1]} : vector<16x512xf32> to vector<8x128xf32>
    %177 = arith.truncf %176 : vector<8x128xf32> to vector<8x128xbf16>
    %178 = vector.extract_strided_slice %22 {offsets = [8, 384], sizes = [8, 128], strides = [1, 1]} : vector<16x512xf32> to vector<8x128xf32>
    %179 = arith.truncf %178 : vector<8x128xf32> to vector<8x128xbf16>
    %180 = vector.extract_strided_slice %27 {offsets = [8, 384], sizes = [8, 128], strides = [1, 1]} : vector<16x512xf32> to vector<8x128xf32>
    %181 = arith.truncf %180 : vector<8x128xf32> to vector<8x128xbf16>
    %cst_55 = arith.constant dense<0.000000e+00> : vector<8x8xf32>
    %182 = tpu.matmul %177, %179, %cst_55 {dimension_numbers = #tpu.dot_dimension_numbers<[1], [1], [0], [0], [0, 0, 1, 0], [], []>} : vector<8x128xbf16>, vector<8x128xbf16>, vector<8x8xf32> -> vector<8x8xf32>
    %cst_56 = arith.constant 0.353553385 : f32
    %183 = vector.broadcast %cst_56 : f32 to vector<8x8xf32>
    %184 = arith.mulf %182, %183 : vector<8x8xf32>
    %cst_57 = arith.constant dense<0xFF800000> : vector<8xf32>
    %185 = vector.multi_reduction <maximumf>, %184, %cst_57 [1] : vector<8x8xf32> to vector<8xf32>
    %186 = vector.shape_cast %185 : vector<8xf32> to vector<8x1xf32>
    %187 = vector.broadcast %186 : vector<8x1xf32> to vector<8x8xf32>
    %188 = arith.subf %184, %187 : vector<8x8xf32>
    %189 = math.exp %188 : vector<8x8xf32>
    %cst_58 = arith.constant dense<0.000000e+00> : vector<8xf32>
    %190 = vector.multi_reduction <add>, %189, %cst_58 [1] : vector<8x8xf32> to vector<8xf32>
    %191 = vector.shape_cast %190 : vector<8xf32> to vector<8x1xf32>
    %192 = tpu.reciprocal %191 {approx = true} : vector<8x1xf32> -> vector<8x1xf32>
    %193 = vector.broadcast %192 : vector<8x1xf32> to vector<8x8xf32>
    %194 = arith.mulf %189, %193 : vector<8x8xf32>
    %195 = arith.truncf %194 : vector<8x8xf32> to vector<8x8xbf16>
    %cst_59 = arith.constant dense<0.000000e+00> : vector<8x128xf32>
    %196 = tpu.matmul %195, %181, %cst_59 {dimension_numbers = #tpu.dot_dimension_numbers<[1], [0], [0], [1], [0, 0, 1, 1], [], []>} : vector<8x8xbf16>, vector<8x128xbf16>, vector<8x128xf32> -> vector<8x128xf32>
    %197 = tpu.concatenate %133, %154, %175, %196 in 1 : vector<8x128xf32>, vector<8x128xf32>, vector<8x128xf32>, vector<8x128xf32> -> vector<8x512xf32>
    %198 = tpu.concatenate %112, %197 in 0 : vector<8x512xf32>, vector<8x512xf32> -> vector<16x512xf32>
    %199 = arith.truncf %198 : vector<16x512xf32> to vector<16x512xbf16>
    %c0_60 = arith.constant 0 : index
    %c0_61 = arith.constant 0 : index
    %200 = vector.load %arg10[%c0_60, %c0_61] : memref<512x128xbf16, #tpu.memory_space<vmem>>, vector<512x128xbf16>
    %cst_62 = arith.constant dense<0.000000e+00> : vector<16x128xf32>
    %201 = tpu.matmul %199, %200, %cst_62 {dimension_numbers = #tpu.dot_dimension_numbers<[1], [0], [0], [1], [0, 0, 1, 1], [], []>} : vector<16x512xbf16>, vector<512x128xbf16>, vector<16x128xf32> -> vector<16x128xf32>
    %c0_63 = arith.constant 0 : index
    %c0_64 = arith.constant 0 : index
    %202 = vector.load %arg11[%c0_63, %c0_64] : memref<1x128xf32, #tpu.memory_space<vmem>>, vector<1x128xf32>
    %203 = vector.broadcast %202 : vector<1x128xf32> to vector<16x128xf32>
    %204 = arith.addf %201, %203 : vector<16x128xf32>
    %205 = arith.truncf %204 : vector<16x128xf32> to vector<16x128xbf16>
    %c0_65 = arith.constant 0 : index
    %c0_66 = arith.constant 0 : index
    %206 = vector.load %arg12[%c0_65, %c0_66] : memref<128x128xbf16, #tpu.memory_space<vmem>>, vector<128x128xbf16>
    %cst_67 = arith.constant dense<0.000000e+00> : vector<16x128xf32>
    %207 = tpu.matmul %205, %206, %cst_67 {dimension_numbers = #tpu.dot_dimension_numbers<[1], [0], [0], [1], [0, 0, 1, 1], [], []>} : vector<16x128xbf16>, vector<128x128xbf16>, vector<16x128xf32> -> vector<16x128xf32>
    %c0_68 = arith.constant 0 : index
    %c0_69 = arith.constant 0 : index
    %208 = vector.load %arg13[%c0_68, %c0_69] : memref<1x128xf32, #tpu.memory_space<vmem>>, vector<1x128xf32>
    %209 = vector.broadcast %208 : vector<1x128xf32> to vector<16x128xf32>
    %210 = arith.addf %207, %209 : vector<16x128xf32>
    %211 = arith.addf %210, %0 : vector<16x128xf32>
    %cst_70 = arith.constant 0.70721358 : f32
    %212 = vector.broadcast %cst_70 : f32 to vector<16x128xf32>
    %213 = arith.mulf %211, %212 : vector<16x128xf32>
    %c0_71 = arith.constant 0 : index
    %c0_72 = arith.constant 0 : index
    %214 = vector.load %arg14[%c0_71, %c0_72] : memref<16x128xf32, #tpu.memory_space<vmem>>, vector<16x128xf32>
    tpu.vector_store %arg14[%c0_71, %c0_72], %213 {strides = array<i32>} : memref<16x128xf32, #tpu.memory_space<vmem>>, vector<16x128xf32>,
    %cst_73 = arith.constant dense<0.000000e+00> : vector<128xf32>
    %215 = vector.multi_reduction <add>, %213, %cst_73 [0] : vector<16x128xf32> to vector<128xf32>
    %216 = vector.shape_cast %215 : vector<128xf32> to vector<1x128xf32>
    %c0_74 = arith.constant 0 : index
    %c0_75 = arith.constant 0 : index
    %217 = vector.load %arg15[%c0_74, %c0_75] : memref<8x128xf32, #tpu.memory_space<vmem>>, vector<1x128xf32>
    tpu.vector_store %arg15[%c0_74, %c0_75], %216 {strides = array<i32>} : memref<8x128xf32, #tpu.memory_space<vmem>>, vector<1x128xf32>,
    %218 = arith.mulf %213, %213 : vector<16x128xf32>
    %cst_76 = arith.constant dense<0.000000e+00> : vector<128xf32>
    %219 = vector.multi_reduction <add>, %218, %cst_76 [0] : vector<16x128xf32> to vector<128xf32>
    %220 = vector.shape_cast %219 : vector<128xf32> to vector<1x128xf32>
    %c1 = arith.constant 1 : index
    %c0_77 = arith.constant 0 : index
    %221 = vector.load %arg15[%c1, %c0_77] : memref<8x128xf32, #tpu.memory_space<vmem>>, vector<1x128xf32>
    tpu.vector_store %arg15[%c1, %c0_77], %220 {strides = array<i32>} : memref<8x128xf32, #tpu.memory_space<vmem>>, vector<1x128xf32>,
    %cst_78 = arith.constant 0.000000e+00 : f32
    %222 = vector.broadcast %cst_78 : f32 to vector<6x128xf32>
    %c2 = arith.constant 2 : index
    %c0_79 = arith.constant 0 : index
    %223 = vector.load %arg15[%c2, %c0_79] : memref<8x128xf32, #tpu.memory_space<vmem>>, vector<6x128xf32>
    tpu.vector_store %arg15[%c2, %c0_79], %222 {strides = array<i32>} : memref<8x128xf32, #tpu.memory_space<vmem>>, vector<6x128xf32>,
    return
  }
  func.func @transform_0(%arg0: i32) -> (i32, i32) {
    %c0_i32 = arith.constant 0 : i32
    %c0_i32_0 = arith.constant 0 : i32
    return %arg0, %c0_i32 : i32, i32
  }
  func.func @transform_1(%arg0: i32) -> (i32, i32) {
    %c0_i32 = arith.constant 0 : i32
    %c0_i32_0 = arith.constant 0 : i32
    %c0_i32_1 = arith.constant 0 : i32
    return %c0_i32, %c0_i32_0 : i32, i32
  }
  func.func @transform_2(%arg0: i32) -> (i32, i32) {
    %c0_i32 = arith.constant 0 : i32
    %c0_i32_0 = arith.constant 0 : i32
    %c0_i32_1 = arith.constant 0 : i32
    return %c0_i32, %c0_i32_0 : i32, i32
  }
  func.func @transform_3(%arg0: i32) -> (i32, i32) {
    %c0_i32 = arith.constant 0 : i32
    %c0_i32_0 = arith.constant 0 : i32
    %c0_i32_1 = arith.constant 0 : i32
    return %c0_i32, %c0_i32_0 : i32, i32
  }
  func.func @transform_4(%arg0: i32) -> (i32, i32) {
    %c0_i32 = arith.constant 0 : i32
    %c0_i32_0 = arith.constant 0 : i32
    %c0_i32_1 = arith.constant 0 : i32
    return %c0_i32, %c0_i32_0 : i32, i32
  }
  func.func @transform_5(%arg0: i32) -> (i32, i32) {
    %c0_i32 = arith.constant 0 : i32
    %c0_i32_0 = arith.constant 0 : i32
    %c0_i32_1 = arith.constant 0 : i32
    return %c0_i32, %c0_i32_0 : i32, i32
  }
  func.func @transform_6(%arg0: i32) -> (i32, i32) {
    %c0_i32 = arith.constant 0 : i32
    %c0_i32_0 = arith.constant 0 : i32
    %c0_i32_1 = arith.constant 0 : i32
    return %c0_i32, %c0_i32_0 : i32, i32
  }
  func.func @transform_7(%arg0: i32) -> (i32, i32) {
    %c0_i32 = arith.constant 0 : i32
    %c0_i32_0 = arith.constant 0 : i32
    %c0_i32_1 = arith.constant 0 : i32
    return %c0_i32, %c0_i32_0 : i32, i32
  }
  func.func @transform_8(%arg0: i32) -> (i32, i32) {
    %c0_i32 = arith.constant 0 : i32
    %c0_i32_0 = arith.constant 0 : i32
    %c0_i32_1 = arith.constant 0 : i32
    return %c0_i32, %c0_i32_0 : i32, i32
  }
  func.func @transform_9(%arg0: i32) -> (i32, i32) {
    %c0_i32 = arith.constant 0 : i32
    %c0_i32_0 = arith.constant 0 : i32
    %c0_i32_1 = arith.constant 0 : i32
    return %c0_i32, %c0_i32_0 : i32, i32
  }
  func.func @transform_10(%arg0: i32) -> (i32, i32) {
    %c0_i32 = arith.constant 0 : i32
    %c0_i32_0 = arith.constant 0 : i32
    %c0_i32_1 = arith.constant 0 : i32
    return %c0_i32, %c0_i32_0 : i32, i32
  }
  func.func @transform_11(%arg0: i32) -> (i32, i32) {
    %c0_i32 = arith.constant 0 : i32
    %c0_i32_0 = arith.constant 0 : i32
    %c0_i32_1 = arith.constant 0 : i32
    return %c0_i32, %c0_i32_0 : i32, i32
  }
  func.func @transform_12(%arg0: i32) -> (i32, i32) {
    %c0_i32 = arith.constant 0 : i32
    %c0_i32_0 = arith.constant 0 : i32
    %c0_i32_1 = arith.constant 0 : i32
    return %c0_i32, %c0_i32_0 : i32, i32
  }
  func.func @transform_13(%arg0: i32) -> (i32, i32) {
    %c0_i32 = arith.constant 0 : i32
    %c0_i32_0 = arith.constant 0 : i32
    return %arg0, %c0_i32 : i32, i32
  }
  func.func @transform_14(%arg0: i32) -> (i32, i32) {
    %c0_i32 = arith.constant 0 : i32
    %c0_i32_0 = arith.constant 0 : i32
    return %arg0, %c0_i32 : i32, i32
  }
}

module attributes {stable_mosaic.version = 11 : i64} {
  func.func @_mlp_kernel(%arg0: i32, %arg1: memref<16x128xf32, #tpu.memory_space<vmem>>, %arg2: memref<1x128xf32, #tpu.memory_space<vmem>>, %arg3: memref<1x128xf32, #tpu.memory_space<vmem>>, %arg4: memref<128x128xbf16, #tpu.memory_space<vmem>>, %arg5: memref<1x128xf32, #tpu.memory_space<vmem>>, %arg6: memref<128x128xbf16, #tpu.memory_space<vmem>>, %arg7: memref<1x128xf32, #tpu.memory_space<vmem>>, %arg8: memref<16x128xf32, #tpu.memory_space<vmem>>, %arg9: memref<8x128xf32, #tpu.memory_space<vmem>>) attributes {dimension_semantics = [#tpu.dimension_semantics<parallel>], iteration_bounds = array<i64: 1>, scalar_prefetch = 0 : i64, scratch_operands = 0 : i64, tpu.core_type = #tpu.core_type<tc>, window_params = [{transform_indices = @transform_0, window_bounds = array<i64: 16, 128>}, {pipeline_mode = #tpu.pipeline_mode<synchronous>, transform_indices = @transform_1, window_bounds = array<i64: 1, 128>}, {pipeline_mode = #tpu.pipeline_mode<synchronous>, transform_indices = @transform_2, window_bounds = array<i64: 1, 128>}, {pipeline_mode = #tpu.pipeline_mode<synchronous>, transform_indices = @transform_3, window_bounds = array<i64: 128, 128>}, {pipeline_mode = #tpu.pipeline_mode<synchronous>, transform_indices = @transform_4, window_bounds = array<i64: 1, 128>}, {pipeline_mode = #tpu.pipeline_mode<synchronous>, transform_indices = @transform_5, window_bounds = array<i64: 128, 128>}, {pipeline_mode = #tpu.pipeline_mode<synchronous>, transform_indices = @transform_6, window_bounds = array<i64: 1, 128>}, {transform_indices = @transform_7, window_bounds = array<i64: 16, 128>}, {transform_indices = @transform_8, window_bounds = array<i64: 8, 128>}]} {
    %c0 = arith.constant 0 : index
    %c0_0 = arith.constant 0 : index
    %0 = vector.load %arg1[%c0, %c0_0] : memref<16x128xf32, #tpu.memory_space<vmem>>, vector<16x128xf32>
    %c0_1 = arith.constant 0 : index
    %c0_2 = arith.constant 0 : index
    %1 = vector.load %arg2[%c0_1, %c0_2] : memref<1x128xf32, #tpu.memory_space<vmem>>, vector<1x128xf32>
    %2 = vector.broadcast %1 : vector<1x128xf32> to vector<16x128xf32>
    %3 = arith.mulf %0, %2 : vector<16x128xf32>
    %c0_3 = arith.constant 0 : index
    %c0_4 = arith.constant 0 : index
    %4 = vector.load %arg3[%c0_3, %c0_4] : memref<1x128xf32, #tpu.memory_space<vmem>>, vector<1x128xf32>
    %5 = vector.broadcast %4 : vector<1x128xf32> to vector<16x128xf32>
    %6 = arith.addf %3, %5 : vector<16x128xf32>
    %7 = arith.truncf %6 : vector<16x128xf32> to vector<16x128xbf16>
    %c0_5 = arith.constant 0 : index
    %c0_6 = arith.constant 0 : index
    %8 = vector.load %arg4[%c0_5, %c0_6] : memref<128x128xbf16, #tpu.memory_space<vmem>>, vector<128x128xbf16>
    %cst = arith.constant dense<0.000000e+00> : vector<16x128xf32>
    %9 = tpu.matmul %7, %8, %cst {dimension_numbers = #tpu.dot_dimension_numbers<[1], [0], [0], [1], [0, 0, 1, 1], [], []>} : vector<16x128xbf16>, vector<128x128xbf16>, vector<16x128xf32> -> vector<16x128xf32>
    %c0_7 = arith.constant 0 : index
    %c0_8 = arith.constant 0 : index
    %10 = vector.load %arg5[%c0_7, %c0_8] : memref<1x128xf32, #tpu.memory_space<vmem>>, vector<1x128xf32>
    %11 = vector.broadcast %10 : vector<1x128xf32> to vector<16x128xf32>
    %12 = arith.addf %9, %11 : vector<16x128xf32>
    %cst_9 = arith.constant 5.000000e-01 : f32
    %13 = vector.broadcast %cst_9 : f32 to vector<16x128xf32>
    %14 = arith.mulf %13, %12 : vector<16x128xf32>
    %cst_10 = arith.constant 0.707106769 : f32
    %15 = vector.broadcast %cst_10 : f32 to vector<16x128xf32>
    %16 = arith.mulf %12, %15 : vector<16x128xf32>
    %cst_11 = arith.constant 0.000000e+00 : f32
    %17 = vector.broadcast %cst_11 : f32 to vector<16x128xf32>
    %18 = arith.cmpf oge, %16, %17 : vector<16x128xf32>
    %cst_12 = arith.constant 1.000000e+00 : f32
    %cst_13 = arith.constant -1.000000e+00 : f32
    %19 = vector.broadcast %cst_12 : f32 to vector<16x128xf32>
    %20 = vector.broadcast %cst_13 : f32 to vector<16x128xf32>
    %21 = arith.select %18, %19, %20 : vector<16x128xi1>, vector<16x128xf32>
    %22 = math.absf %16 : vector<16x128xf32>
    %cst_14 = arith.constant 0.327591091 : f32
    %23 = vector.broadcast %cst_14 : f32 to vector<16x128xf32>
    %24 = arith.mulf %23, %22 : vector<16x128xf32>
    %cst_15 = arith.constant 1.000000e+00 : f32
    %25 = vector.broadcast %cst_15 : f32 to vector<16x128xf32>
    %26 = arith.addf %25, %24 : vector<16x128xf32>
    %27 = tpu.reciprocal %26 {approx = true} : vector<16x128xf32> -> vector<16x128xf32>
    %cst_16 = arith.constant 1.06140542 : f32
    %28 = vector.broadcast %cst_16 : f32 to vector<16x128xf32>
    %29 = arith.mulf %28, %27 : vector<16x128xf32>
    %cst_17 = arith.constant -1.45315206 : f32
    %30 = vector.broadcast %cst_17 : f32 to vector<16x128xf32>
    %31 = arith.addf %29, %30 : vector<16x128xf32>
    %32 = arith.mulf %31, %27 : vector<16x128xf32>
    %cst_18 = arith.constant 1.42141378 : f32
    %33 = vector.broadcast %cst_18 : f32 to vector<16x128xf32>
    %34 = arith.addf %32, %33 : vector<16x128xf32>
    %35 = arith.mulf %34, %27 : vector<16x128xf32>
    %cst_19 = arith.constant -0.284496725 : f32
    %36 = vector.broadcast %cst_19 : f32 to vector<16x128xf32>
    %37 = arith.addf %35, %36 : vector<16x128xf32>
    %38 = arith.mulf %37, %27 : vector<16x128xf32>
    %cst_20 = arith.constant 0.254829586 : f32
    %39 = vector.broadcast %cst_20 : f32 to vector<16x128xf32>
    %40 = arith.addf %38, %39 : vector<16x128xf32>
    %41 = arith.mulf %40, %27 : vector<16x128xf32>
    %cst_21 = arith.constant 0.000000e+00 : f32
    %42 = vector.broadcast %cst_21 : f32 to vector<16x128xf32>
    %43 = arith.subf %42, %22 : vector<16x128xf32>
    %44 = arith.mulf %43, %22 : vector<16x128xf32>
    %45 = math.exp %44 : vector<16x128xf32>
    %46 = arith.mulf %41, %45 : vector<16x128xf32>
    %cst_22 = arith.constant 1.000000e+00 : f32
    %47 = vector.broadcast %cst_22 : f32 to vector<16x128xf32>
    %48 = arith.subf %47, %46 : vector<16x128xf32>
    %49 = arith.mulf %21, %48 : vector<16x128xf32>
    %cst_23 = arith.constant 1.000000e+00 : f32
    %50 = vector.broadcast %cst_23 : f32 to vector<16x128xf32>
    %51 = arith.addf %50, %49 : vector<16x128xf32>
    %52 = arith.mulf %14, %51 : vector<16x128xf32>
    %53 = arith.truncf %52 : vector<16x128xf32> to vector<16x128xbf16>
    %c0_24 = arith.constant 0 : index
    %c0_25 = arith.constant 0 : index
    %54 = vector.load %arg6[%c0_24, %c0_25] : memref<128x128xbf16, #tpu.memory_space<vmem>>, vector<128x128xbf16>
    %cst_26 = arith.constant dense<0.000000e+00> : vector<16x128xf32>
    %55 = tpu.matmul %53, %54, %cst_26 {dimension_numbers = #tpu.dot_dimension_numbers<[1], [0], [0], [1], [0, 0, 1, 1], [], []>} : vector<16x128xbf16>, vector<128x128xbf16>, vector<16x128xf32> -> vector<16x128xf32>
    %c0_27 = arith.constant 0 : index
    %c0_28 = arith.constant 0 : index
    %56 = vector.load %arg7[%c0_27, %c0_28] : memref<1x128xf32, #tpu.memory_space<vmem>>, vector<1x128xf32>
    %57 = vector.broadcast %56 : vector<1x128xf32> to vector<16x128xf32>
    %58 = arith.addf %55, %57 : vector<16x128xf32>
    %59 = arith.addf %58, %6 : vector<16x128xf32>
    %cst_29 = arith.constant 0.70721358 : f32
    %60 = vector.broadcast %cst_29 : f32 to vector<16x128xf32>
    %61 = arith.mulf %59, %60 : vector<16x128xf32>
    %c0_30 = arith.constant 0 : index
    %c0_31 = arith.constant 0 : index
    %62 = vector.load %arg8[%c0_30, %c0_31] : memref<16x128xf32, #tpu.memory_space<vmem>>, vector<16x128xf32>
    tpu.vector_store %arg8[%c0_30, %c0_31], %61 {strides = array<i32>} : memref<16x128xf32, #tpu.memory_space<vmem>>, vector<16x128xf32>,
    %cst_32 = arith.constant dense<0.000000e+00> : vector<128xf32>
    %63 = vector.multi_reduction <add>, %61, %cst_32 [0] : vector<16x128xf32> to vector<128xf32>
    %64 = vector.shape_cast %63 : vector<128xf32> to vector<1x128xf32>
    %c0_33 = arith.constant 0 : index
    %c0_34 = arith.constant 0 : index
    %65 = vector.load %arg9[%c0_33, %c0_34] : memref<8x128xf32, #tpu.memory_space<vmem>>, vector<1x128xf32>
    tpu.vector_store %arg9[%c0_33, %c0_34], %64 {strides = array<i32>} : memref<8x128xf32, #tpu.memory_space<vmem>>, vector<1x128xf32>,
    %66 = arith.mulf %61, %61 : vector<16x128xf32>
    %cst_35 = arith.constant dense<0.000000e+00> : vector<128xf32>
    %67 = vector.multi_reduction <add>, %66, %cst_35 [0] : vector<16x128xf32> to vector<128xf32>
    %68 = vector.shape_cast %67 : vector<128xf32> to vector<1x128xf32>
    %c1 = arith.constant 1 : index
    %c0_36 = arith.constant 0 : index
    %69 = vector.load %arg9[%c1, %c0_36] : memref<8x128xf32, #tpu.memory_space<vmem>>, vector<1x128xf32>
    tpu.vector_store %arg9[%c1, %c0_36], %68 {strides = array<i32>} : memref<8x128xf32, #tpu.memory_space<vmem>>, vector<1x128xf32>,
    %cst_37 = arith.constant 0.000000e+00 : f32
    %70 = vector.broadcast %cst_37 : f32 to vector<6x128xf32>
    %c2 = arith.constant 2 : index
    %c0_38 = arith.constant 0 : index
    %71 = vector.load %arg9[%c2, %c0_38] : memref<8x128xf32, #tpu.memory_space<vmem>>, vector<6x128xf32>
    tpu.vector_store %arg9[%c2, %c0_38], %70 {strides = array<i32>} : memref<8x128xf32, #tpu.memory_space<vmem>>, vector<6x128xf32>,
    return
  }
  func.func @transform_0(%arg0: i32) -> (i32, i32) {
    %c0_i32 = arith.constant 0 : i32
    %c0_i32_0 = arith.constant 0 : i32
    return %arg0, %c0_i32 : i32, i32
  }
  func.func @transform_1(%arg0: i32) -> (i32, i32) {
    %c0_i32 = arith.constant 0 : i32
    %c0_i32_0 = arith.constant 0 : i32
    %c0_i32_1 = arith.constant 0 : i32
    return %c0_i32, %c0_i32_0 : i32, i32
  }
  func.func @transform_2(%arg0: i32) -> (i32, i32) {
    %c0_i32 = arith.constant 0 : i32
    %c0_i32_0 = arith.constant 0 : i32
    %c0_i32_1 = arith.constant 0 : i32
    return %c0_i32, %c0_i32_0 : i32, i32
  }
  func.func @transform_3(%arg0: i32) -> (i32, i32) {
    %c0_i32 = arith.constant 0 : i32
    %c0_i32_0 = arith.constant 0 : i32
    %c0_i32_1 = arith.constant 0 : i32
    return %c0_i32, %c0_i32_0 : i32, i32
  }
  func.func @transform_4(%arg0: i32) -> (i32, i32) {
    %c0_i32 = arith.constant 0 : i32
    %c0_i32_0 = arith.constant 0 : i32
    %c0_i32_1 = arith.constant 0 : i32
    return %c0_i32, %c0_i32_0 : i32, i32
  }
  func.func @transform_5(%arg0: i32) -> (i32, i32) {
    %c0_i32 = arith.constant 0 : i32
    %c0_i32_0 = arith.constant 0 : i32
    %c0_i32_1 = arith.constant 0 : i32
    return %c0_i32, %c0_i32_0 : i32, i32
  }
  func.func @transform_6(%arg0: i32) -> (i32, i32) {
    %c0_i32 = arith.constant 0 : i32
    %c0_i32_0 = arith.constant 0 : i32
    %c0_i32_1 = arith.constant 0 : i32
    return %c0_i32, %c0_i32_0 : i32, i32
  }
  func.func @transform_7(%arg0: i32) -> (i32, i32) {
    %c0_i32 = arith.constant 0 : i32
    %c0_i32_0 = arith.constant 0 : i32
    return %arg0, %c0_i32 : i32, i32
  }
  func.func @transform_8(%arg0: i32) -> (i32, i32) {
    %c0_i32 = arith.constant 0 : i32
    %c0_i32_0 = arith.constant 0 : i32
    return %arg0, %c0_i32 : i32, i32
  }
}

</mosaic_0001>

<bundles_post_ra>
// kernel: transformer_encoder_block.5
= control target key start
LH: loop header
LB: loop body
LE: loop exit
PB: predicated region body
PF: predicated region fallthrough
CT: control target
= control target key end

     0   :  { %s80_s0 = inlined_call_operand.vmem [shape: f32[16,128], index: 0, kind: input, shape index: {}]   ;;  %s81_s1 = inlined_call_operand.vmem [shape: f32[1,128], index: 1, kind: input, shape index: {}]   ;;  %s82_s2 = inlined_call_operand.vmem [shape: f32[1,128], index: 2, kind: input, shape index: {}]   ;;  %s83_s3 = inlined_call_operand.vmem [shape: f32[16,128], index: 3, kind: output, shape index: {}]  }
   0x1   :  { %v14_v0 = vld [vmem:[%s80_s0] sm:$0xff]  ;;  %v15_v4 = vld [vmem:[%s80_s0 + $0x8] sm:$0xff] }
   0x2   :  { %v40_v1 = vld [vmem:[%s81_s1] ss:$0 sm:$0xff] }
   0x3   :  { %v41_v2 = vld [vmem:[%s82_s2] ss:$0 sm:$0xff]  ;;  %v23_v3 = vmul.f32 %v40_v1, %v14_v0  ;;  %v24_v5 = vmul.f32 %v40_v1, %v15_v4 }
   0x5   :  { %v32_v6 = vadd.f32 %v41_v2, %v23_v3  ;;  %v33_v7 = vadd.f32 %v41_v2, %v24_v5 }
   0x7   :  { %34 = vst [vmem:[%s83_s3] sm:$0xff] %v32_v6  ;;  %35 = vst [vmem:[%s83_s3 + $0x8] sm:$0xff] %v33_v7 }

// kernel: transformer_encoder_block.4
= control target key start
LH: loop header
LB: loop body
LE: loop exit
PB: predicated region body
PF: predicated region fallthrough
CT: control target
= control target key end

     0   :  { %v465_v0 = vmov 0.0   ;;  %vm466_vm0 = vmmov 0   ;;  %s621_s3 = inlined_call_operand.vmem [shape: bf16[128,128], index: 3, kind: input, shape index: {}]   ;;  %s622_s0 = inlined_call_operand.vmem [shape: f32[16,128], index: 0, kind: input, shape index: {}]   ;;  %s623_s1 = inlined_call_operand.vmem [shape: f32[1,128], index: 1, kind: input, shape index: {}]   ;;  %s624_s2 = inlined_call_operand.vmem [shape: f32[1,128], index: 2, kind: input, shape index: {}]   ;;  %s625_s5 = inlined_call_operand.vmem [shape: bf16[128,128], index: 5, kind: input, shape index: {}]   ;;  %s626_s4 = inlined_call_operand.vmem [shape: f32[1,128], index: 4, kind: input, shape index: {}]   ;;  %s627_s8 = inlined_call_operand.vmem [shape: f32[8,128], index: 8, kind: output, shape index: {1}]   ;;  %s628_s6 = inlined_call_operand.vmem [shape: f32[1,128], index: 6, kind: input, shape index: {}]   ;;  %s629_s7 = inlined_call_operand.vmem [shape: f32[16,128], index: 7, kind: output, shape index: {0}]  }
   0x1   :  { %398 = vmatprep.subr.bf16.mxu0 %v465_v0  ;;  %v441_v1 = vld [vmem:[%s621_s3] sm:$0xff]   ;;  %414 = vmatprep.mubr.msk.bf16.mxu0 %vm466_vm0, %v465_v0  ;;  %v442_v2 = vld [vmem:[%s621_s3 + $0x8] sm:$0xff]   ;;  %v443_v3 = vld [vmem:[%s621_s3 + $0x10] sm:$0xff]   ;;  %351 = vst [vmem:[%s627_s8 + $0x2] sm:$0x3f] %v465_v0 }
   0x2   :  { %418 = vmatprep.subr.bf16.mxu1 %v465_v0  ;;  %434 = vmatprep.mubr.msk.bf16.mxu1 %vm466_vm0, %v465_v0  ;;  %v444_v4 = vld [vmem:[%s621_s3 + $0x18] sm:$0xff]   ;;  %v445_v5 = vld [vmem:[%s621_s3 + $0x20] sm:$0xff]   ;;  %v446_v6 = vld [vmem:[%s621_s3 + $0x28] sm:$0xff]  }
   0x3   :  { %399 = vmatpush3.bf16.msra.mxu0 %v441_v1  ;;  %v29_v7 = vld [vmem:[%s622_s0] sm:$0xff]  ;;  %v30_v8 = vld [vmem:[%s622_s0 + $0x8] sm:$0xff]  ;;  %v447_v12 = vld [vmem:[%s621_s3 + $0x30] sm:$0xff]  }
   0x4   :  { %400 = vmatprep.subr.bf16.mxu0 %v465_v0  ;;  %v360_v9 = vld [vmem:[%s623_s1] ss:$0 sm:$0xff]  ;;  %v448_v16 = vld [vmem:[%s621_s3 + $0x38] sm:$0xff]   ;;  %v450_v19 = vld [vmem:[%s625_s5 + $0x8] sm:$0xff]  }
   0x5   :  { %v38_v10 = vmul.f32 %v360_v9, %v29_v7  ;;  %v39_v11 = vmul.f32 %v360_v9, %v30_v8  ;;  %v361_v13 = vld [vmem:[%s624_s2] ss:$0 sm:$0xff]  ;;  %v451_v20 = vld [vmem:[%s625_s5 + $0x10] sm:$0xff]   ;;  %v452_v21 = vld [vmem:[%s625_s5 + $0x18] sm:$0xff]   ;;  %v467_v8 = vmov -1.0  }
   0x6   :  { %v449_v18 = vld [vmem:[%s625_s5] sm:$0xff]   ;;  %v454_v23 = vld [vmem:[%s625_s5 + $0x28] sm:$0xff]   ;;  %v455_v24 = vld [vmem:[%s625_s5 + $0x30] sm:$0xff]  }
   0x7   :  { %401 = vmatpush3.bf16.msra.mxu0 %v442_v2  ;;  %v556_v14 = vadd.f32 %v361_v13, %v38_v10  ;;  %v558_v15 = vadd.f32 %v361_v13, %v39_v11  ;;  %419 = vmatpush3.bf16.msra.mxu1 %v449_v18  ;;  %v453_v22 = vld [vmem:[%s625_s5 + $0x20] sm:$0xff]   ;;  %v456_v25 = vld [vmem:[%s625_s5 + $0x38] sm:$0xff]  }
   0x8   :  { %402 = vmatprep.subr.bf16.mxu0 %v465_v0  ;;  %420 = vmatprep.subr.bf16.mxu1 %v465_v0  ;;  %v362_v26 = vld [vmem:[%s626_s4] ss:$0 sm:$0xff] }
   0x9   :  { %v49_v17 = vpack.c.bf16 %v558_v15, %v556_v14 }
   0xb   :  { %403 = vmatpush3.bf16.msra.mxu0 %v443_v3  ;;  %421 = vmatpush3.bf16.msra.mxu1 %v450_v19 }
   0xc   :  { %404 = vmatprep.subr.bf16.mxu0 %v465_v0  ;;  %422 = vmatprep.subr.bf16.mxu1 %v465_v0 }
   0xf   :  { %405 = vmatpush3.bf16.msra.mxu0 %v444_v4  ;;  %423 = vmatpush3.bf16.msra.mxu1 %v451_v20 }
  0x10   :  { %406 = vmatprep.subr.bf16.mxu0 %v465_v0  ;;  %424 = vmatprep.subr.bf16.mxu1 %v465_v0 }
  0x13   :  { %407 = vmatpush3.bf16.msra.mxu0 %v445_v5  ;;  %425 = vmatpush3.bf16.msra.mxu1 %v452_v21 }
  0x14   :  { %408 = vmatprep.subr.bf16.mxu0 %v465_v0  ;;  %426 = vmatprep.subr.bf16.mxu1 %v465_v0 }
  0x17   :  { %409 = vmatpush3.bf16.msra.mxu0 %v446_v6  ;;  %427 = vmatpush3.bf16.msra.mxu1 %v453_v22 }
  0x18   :  { %410 = vmatprep.subr.bf16.mxu0 %v465_v0  ;;  %428 = vmatprep.subr.bf16.mxu1 %v465_v0 }
  0x1b   :  { %411 = vmatpush3.bf16.msra.mxu0 %v447_v12  ;;  %429 = vmatpush3.bf16.msra.mxu1 %v454_v23 }
  0x1c   :  { %412 = vmatprep.subr.bf16.mxu0 %v465_v0  ;;  %430 = vmatprep.subr.bf16.mxu1 %v465_v0 }
  0x1f   :  { %413 = vmatpush3.bf16.msra.mxu0 %v448_v16  ;;  %431 = vmatpush3.bf16.msra.mxu1 %v455_v24  ;;  %v371_v24 = vld [vmem:[%s628_s6] ss:$0 sm:$0xff] }
  0x20   :  { %432 = vmatprep.subr.bf16.mxu1 %v465_v0 }
  0x22   :  { %415 = vmatmul.mubr.bf16.vlgmr.msra.gmra.mrb[0].mxu0 %v49_v17 }
  0x23   :  { %433 = vmatpush3.bf16.msra.mxu1 %v456_v25 }
  0xf5   :  { %v155_v27 = vpop.f32.mrb[0].mxu0 }
  0xf6   :  { %v156_v28 = vadd.f32 %v362_v26, %v155_v27  ;;  %v416_v29 = vpop.f32.mrb[1].mxu0 }
  0xf7   :  { %v158_v30 = vpop.f32.mrb[2].mxu0 }
  0xf8   :  { %v164_v31 = vmul.f32 0.70710677, %v156_v28  ;;  %v159_v32 = vadd.f32 %v362_v26, %v158_v30  ;;  %v417_v33 = vpop.f32.mrb[3].mxu0  ;;  %v162_v18 = vmul.f32 0.5, %v156_v28 }
  0xfa   :  { %v170_v34 = vand.u32 2147483647, %v164_v31  ;;  %v165_v35 = vmul.f32 0.70710677, %v159_v32  ;;  %vm166_vm1 = vcmp.ge.f32.partialorder %v164_v31, 0.0  ;;  %v163_v19 = vmul.f32 0.5, %v159_v32 }
  0xfb   :  { %v168_v9 = vsel %vm166_vm1, 1.0, %v467_v8 }
  0xfc   :  { %v172_v36 = vmul.f32 0.3275911, %v170_v34  ;;  %v171_v37 = vand.u32 2147483647, %v165_v35  ;;  %v196_v41 = vsub.f32 0.0, %v170_v34  ;;  %vm167_vm2 = vcmp.ge.f32.partialorder %v165_v35, 0.0 }
  0xfd   :  { %v169_v13 = vsel %vm167_vm2, 1.0, %v467_v8 }
  0xfe   :  { %v174_v38 = vadd.f32 1.0, %v172_v36  ;;  %v173_v39 = vmul.f32 0.3275911, %v171_v37  ;;  %v197_v42 = vsub.f32 0.0, %v171_v37  ;;  %v198_v44 = vmul.f32 %v196_v41, %v170_v34 }
 0x100   :  { %457 = vrcp.f32 %v174_v38  ;;  %v175_v40 = vadd.f32 1.0, %v173_v39  ;;  %v199_v48 = vmul.f32 %v197_v42, %v171_v37  ;;  %v200_v49 = vmul.f32 1.442695, %v198_v44 }
 0x102   :  { %459 = vrcp.f32 %v175_v40  ;;  %v202_v54 = vmul.f32 1.442695, %v199_v48 }
 0x103   :  { %461 = vpow2.f32 %v200_v49 }
 0x104   :  { %463 = vpow2.f32 %v202_v54 }
 0x10a   :  { %v458_v43 = vpop.eup %457 }
 0x10b   :  { %v178_v45 = vmul.f32 1.0614054, %v458_v43 }
 0x10c   :  { %v460_v46 = vpop.eup %459 }
 0x10d   :  { %v180_v47 = vadd.f32 -1.4531521, %v178_v45  ;;  %v179_v50 = vmul.f32 1.0614054, %v460_v46  ;;  %v462_v2 = vpop.eup %461 }
 0x10e   :  { %v464_v6 = vpop.eup %463 }
 0x10f   :  { %v182_v51 = vmul.f32 %v458_v43, %v180_v47  ;;  %v181_v52 = vadd.f32 -1.4531521, %v179_v50 }
 0x111   :  { %v184_v53 = vadd.f32 1.4214138, %v182_v51  ;;  %v183_v55 = vmul.f32 %v460_v46, %v181_v52 }
 0x113   :  { %v186_v56 = vmul.f32 %v458_v43, %v184_v53  ;;  %v185_v57 = vadd.f32 1.4214138, %v183_v55 }
 0x115   :  { %v188_v58 = vadd.f32 -0.28449672, %v186_v56  ;;  %v187_v59 = vmul.f32 %v460_v46, %v185_v57 }
 0x117   :  { %v190_v60 = vmul.f32 %v458_v43, %v188_v58  ;;  %v189_v61 = vadd.f32 -0.28449672, %v187_v59 }
 0x119   :  { %v192_v62 = vadd.f32 0.2548296, %v190_v60  ;;  %v191_v63 = vmul.f32 %v460_v46, %v189_v61 }
 0x11b   :  { %v194_v1 = vmul.f32 %v458_v43, %v192_v62  ;;  %v193_v3 = vadd.f32 0.2548296, %v191_v63 }
 0x11d   :  { %v204_v4 = vmul.f32 %v462_v2, %v194_v1  ;;  %v195_v5 = vmul.f32 %v460_v46, %v193_v3 }
 0x11f   :  { %v206_v7 = vsub.f32 1.0, %v204_v4  ;;  %v205_v10 = vmul.f32 %v464_v6, %v195_v5 }
 0x121   :  { %v208_v11 = vmul.f32 %v206_v7, %v168_v9  ;;  %v207_v12 = vsub.f32 1.0, %v205_v10 }
 0x123   :  { %v210_v16 = vadd.f32 1.0, %v208_v11  ;;  %v209_v17 = vmul.f32 %v207_v12, %v169_v13 }
 0x125   :  { %v211_v20 = vadd.f32 1.0, %v209_v17  ;;  %v212_v21 = vmul.f32 %v210_v16, %v162_v18 }
 0x127   :  { %v213_v22 = vmul.f32 %v211_v20, %v163_v19 }
 0x129   :  { %v214_v23 = vpack.c.bf16 %v213_v22, %v212_v21 }
 0x12b   :  { %435 = vmatmul.mubr.bf16.vlgmr.msra.gmra.mrb[0].mxu1 %v214_v23 }
 0x1fe   :  { %v320_v25 = vpop.f32.mrb[0].mxu1 }
 0x1ff   :  { %v321_v26 = vadd.f32 %v371_v24, %v320_v25  ;;  %v436_v27 = vpop.f32.mrb[1].mxu1 }
 0x200   :  { %v323_v29 = vpop.f32.mrb[2].mxu1 }
 0x201   :  { %v327_v28 = vadd.f32 %v321_v26, %v556_v14  ;;  %v324_v30 = vadd.f32 %v371_v24, %v323_v29  ;;  %v437_v31 = vpop.f32.mrb[3].mxu1 }
 0x203   :  { %v329_v32 = vmul.f32 0.7072136, %v327_v28  ;;  %v328_v33 = vadd.f32 %v324_v30, %v558_v15 }
 0x205   :  { %331 = vst [vmem:[%s629_s7] sm:$0xff] %v329_v32  ;;  %v330_v0 = vmul.f32 0.7072136, %v328_v33  ;;  %v341_v34 = vmul.f32 %v329_v32, %v329_v32 }
 0x207   :  { %332 = vst [vmem:[%s629_s7 + $0x8] sm:$0xff] %v330_v0  ;;  %v333_v35 = vadd.f32 %v330_v0, %v329_v32  ;;  %v342_v36 = vmul.f32 %v330_v0, %v330_v0 }
 0x209   :  { %v334_v37 = vrot.slane %v333_v35, 4  ;;  %v343_v38 = vadd.f32 %v342_v36, %v341_v34 }
 0x20b   :  { %v335_v14 = vadd.f32 %v334_v37, %v333_v35  ;;  %v344_v39 = vrot.slane %v343_v38, 4 }
 0x20d   :  { %v336_v40 = vrot.slane %v335_v14, 2  ;;  %v345_v41 = vadd.f32 %v344_v39, %v343_v38 }
 0x20f   :  { %v337_v42 = vadd.f32 %v336_v40, %v335_v14  ;;  %v346_v15 = vrot.slane %v345_v41, 2 }
 0x211   :  { %v338_v43 = vrot.slane %v337_v42, 1  ;;  %v347_v44 = vadd.f32 %v346_v15, %v345_v41 }
 0x213   :  { %v339_v45 = vadd.f32 %v338_v43, %v337_v42  ;;  %v348_v46 = vrot.slane %v347_v44, 1 }
 0x215   :  { %340 = vst [vmem:[%s627_s8] sm:$0x1] %v339_v45  ;;  %v349_v47 = vadd.f32 %v348_v46, %v347_v44 }
 0x217   :  { %350 = vst [vmem:[%s627_s8 + $0x1] sm:$0x1] %v349_v47 }

// kernel: transformer_encoder_block.3
= control target key start
LH: loop header
LB: loop body
LE: loop exit
PB: predicated region body
PF: predicated region fallthrough
CT: control target
= control target key end

     0   :  { %v3180_v1 = vmov 0   ;;  %v3181_v2 = vmov 0.0   ;;  %vm3182_vm0 = vmmov 0   ;;  %v84_v63 = vlaneseq  ;;  %s3977_s1 = inlined_call_operand.vmem [shape: bf16[128,384], index: 1, kind: input, shape index: {}]   ;;  %s3978_s3 = inlined_call_operand.vmem [shape: bf16[128,512], index: 3, kind: input, shape index: {}]   ;;  %s3979_s0 = inlined_call_operand.vmem [shape: f32[16,128], index: 0, kind: input, shape index: {}]   ;;  %s3980_s4 = inlined_call_operand.vmem [shape: bf16[128,512], index: 4, kind: input, shape index: {}]   ;;  %s3981_s5 = inlined_call_operand.vmem [shape: bf16[128,512], index: 5, kind: input, shape index: {}]   ;;  %s3982_s2 = inlined_call_operand.vmem [shape: f32[1,384], index: 2, kind: input, shape index: {}]   ;;  %s3983_s6 = inlined_call_operand.vmem [shape: f32[1,512], index: 6, kind: input, shape index: {}]   ;;  %s3984_s7 = inlined_call_operand.vmem [shape: f32[1,512], index: 7, kind: input, shape index: {}]   ;;  %s3985_s8 = inlined_call_operand.vmem [shape: f32[1,512], index: 8, kind: input, shape index: {}]   ;;  %s3986_s9 = inlined_call_operand.vmem [shape: bf16[512,128], index: 9, kind: input, shape index: {}]   ;;  %s3987_s11 = inlined_call_operand.vmem [shape: bf16[128,128], index: 11, kind: input, shape index: {}]   ;;  %s3988_s10 = inlined_call_operand.vmem [shape: f32[1,128], index: 10, kind: input, shape index: {}]   ;;  %s3989_s14 = inlined_call_operand.vmem [shape: f32[8,128], index: 14, kind: output, shape index: {1}]   ;;  %s3990_s12 = inlined_call_operand.vmem [shape: f32[1,128], index: 12, kind: input, shape index: {}]   ;;  %s3991_s13 = inlined_call_operand.vmem [shape: f32[16,128], index: 13, kind: output, shape index: {0}]  }
   0x1   :  { %v2930_v0 = vld [vmem:[%s3977_s1 + $0x4] ss:$12 sps:$4 sm:$0xff]   ;;  %259 = vmatprep.mubr.bf16.mxu0 %v3180_v1  ;;  %2791 = vmatprep.subr.bf16.mxu1 %v3181_v2  ;;  %v2932_v3 = vld [vmem:[%s3977_s1] ss:$12 sps:$4 sm:$0xff]   ;;  %v2933_v4 = vld [vmem:[%s3977_s1 + $0x1c] ss:$12 sps:$4 sm:$0xff]  }
   0x2   :  { %2807 = vmatprep.mubr.msk.bf16.mxu1 %vm3182_vm0, %v3181_v2  ;;  %227 = vmatprep.subr.bf16.mxu0 %v2930_v0  ;;  %v2935_v5 = vld [vmem:[%s3977_s1 + $0x18] ss:$12 sps:$4 sm:$0xff]   ;;  %v2936_v6 = vld [vmem:[%s3977_s1 + $0x34] ss:$12 sps:$4 sm:$0xff]   ;;  %v2938_v7 = vld [vmem:[%s3977_s1 + $0x30] ss:$12 sps:$4 sm:$0xff]  }
   0x3   :  { %228 = vmatpush1.bf16.msra.mxu0 %v2932_v3  ;;  %v2939_v8 = vld [vmem:[%s3977_s1 + $0x4c] ss:$12 sps:$4 sm:$0xff]   ;;  %v2941_v9 = vld [vmem:[%s3977_s1 + $0x48] ss:$12 sps:$4 sm:$0xff]   ;;  %v2942_v10 = vld [vmem:[%s3977_s1 + $0x64] ss:$12 sps:$4 sm:$0xff]  }
   0x4   :  { %229 = vmatprep.subr.bf16.mxu0 %v2933_v4  ;;  %v2954_v11 = vld [vmem:[%s3977_s1 + $0x8] ss:$12 sps:$4 sm:$0xff]   ;;  %v2955_v12 = vld [vmem:[%s3977_s1 + $0x20] ss:$12 sps:$4 sm:$0xff]   ;;  %v2956_v15 = vld [vmem:[%s3977_s1 + $0x38] ss:$12 sps:$4 sm:$0xff]  }
   0x5   :  { %2792 = vmatpush3.bf16.msra.mxu1 %v2954_v11  ;;  %v2944_v13 = vld [vmem:[%s3977_s1 + $0x60] ss:$12 sps:$4 sm:$0xff]   ;;  %v2945_v14 = vld [vmem:[%s3977_s1 + $0x7c] ss:$12 sps:$4 sm:$0xff]   ;;  %v2947_v16 = vld [vmem:[%s3977_s1 + $0x78] ss:$12 sps:$4 sm:$0xff]  }
   0x6   :  { %2793 = vmatprep.subr.bf16.mxu1 %v3181_v2  ;;  %v2948_v17 = vld [vmem:[%s3977_s1 + $0x94] ss:$12 sps:$4 sm:$0xff]   ;;  %v2957_v18 = vld [vmem:[%s3977_s1 + $0x50] ss:$12 sps:$4 sm:$0xff]   ;;  %v2951_v20 = vld [vmem:[%s3977_s1 + $0xac] ss:$12 sps:$4 sm:$0xff]  }
   0x7   :  { %230 = vmatpush1.bf16.msra.mxu0 %v2935_v5  ;;  %v2950_v19 = vld [vmem:[%s3977_s1 + $0x90] ss:$12 sps:$4 sm:$0xff]   ;;  %v2953_v21 = vld [vmem:[%s3977_s1 + $0xa8] ss:$12 sps:$4 sm:$0xff]   ;;  %v47_v22 = vld [vmem:[%s3979_s0] sm:$0xff]  ;;  %v3451_v0 = vshrl.u32 %v84_v63, 7 }
   0x8   :  { %231 = vmatprep.subr.bf16.mxu0 %v2936_v6  ;;  %v2958_v23 = vld [vmem:[%s3977_s1 + $0x68] ss:$12 sps:$4 sm:$0xff]   ;;  %v2959_v27 = vld [vmem:[%s3977_s1 + $0x80] ss:$12 sps:$4 sm:$0xff]   ;;  %v2960_v30 = vld [vmem:[%s3977_s1 + $0x98] ss:$12 sps:$4 sm:$0xff]  }
   0x9   :  { %2794 = vmatpush3.bf16.msra.mxu1 %v2955_v12  ;;  %v48_v24 = vld [vmem:[%s3979_s0 + $0x8] sm:$0xff]  ;;  %v2964_v25 = vld [vmem:[%s3978_s3 + $0x4] ss:$16 sps:$4 sm:$0xff]   ;;  %v2962_v28 = vld [vmem:[%s3978_s3] ss:$16 sps:$4 sm:$0xff]   ;;  %v3454_v3 = vsub.s32 0, %v3451_v0 }
   0xa   :  { %2795 = vmatprep.subr.bf16.mxu1 %v3181_v2  ;;  %v49_v26 = vpack.c.bf16 %v48_v24, %v47_v22  ;;  %v2970_v29 = vld [vmem:[%s3978_s3 + $0x24] ss:$16 sps:$4 sm:$0xff]   ;;  %v2968_v31 = vld [vmem:[%s3978_s3 + $0x20] ss:$16 sps:$4 sm:$0xff]   ;;  %v2967_v34 = vld [vmem:[%s3978_s3 + $0xc] ss:$16 sps:$4 sm:$0xff]  }
   0xb   :  { %232 = vmatpush1.bf16.msra.mxu0 %v2938_v7  ;;  %v2976_v32 = vld [vmem:[%s3978_s3 + $0x44] ss:$16 sps:$4 sm:$0xff]   ;;  %v2961_v33 = vld [vmem:[%s3977_s1 + $0xb0] ss:$12 sps:$4 sm:$0xff]   ;;  %v2965_v37 = vld [vmem:[%s3978_s3 + $0x8] ss:$16 sps:$4 sm:$0xff]  }
   0xc   :  { %233 = vmatprep.subr.bf16.mxu0 %v2939_v8  ;;  %v2974_v35 = vld [vmem:[%s3978_s3 + $0x40] ss:$16 sps:$4 sm:$0xff]   ;;  %v2982_v36 = vld [vmem:[%s3978_s3 + $0x64] ss:$16 sps:$4 sm:$0xff]   ;;  %v2973_v38 = vld [vmem:[%s3978_s3 + $0x2c] ss:$16 sps:$4 sm:$0xff]  }
   0xd   :  { %2796 = vmatpush3.bf16.msra.mxu1 %v2956_v15  ;;  %v2980_v39 = vld [vmem:[%s3978_s3 + $0x60] ss:$16 sps:$4 sm:$0xff]   ;;  %v2988_v40 = vld [vmem:[%s3978_s3 + $0x84] ss:$16 sps:$4 sm:$0xff]   ;;  %v2971_v41 = vld [vmem:[%s3978_s3 + $0x28] ss:$16 sps:$4 sm:$0xff]  }
   0xe   :  { %2797 = vmatprep.subr.bf16.mxu1 %v3181_v2  ;;  %v2979_v42 = vld [vmem:[%s3978_s3 + $0x4c] ss:$16 sps:$4 sm:$0xff]   ;;  %v2986_v43 = vld [vmem:[%s3978_s3 + $0x80] ss:$16 sps:$4 sm:$0xff]   ;;  %v2994_v44 = vld [vmem:[%s3978_s3 + $0xa4] ss:$16 sps:$4 sm:$0xff]  }
   0xf   :  { %234 = vmatpush1.bf16.msra.mxu0 %v2941_v9  ;;  %v2977_v45 = vld [vmem:[%s3978_s3 + $0x48] ss:$16 sps:$4 sm:$0xff]   ;;  %v2985_v46 = vld [vmem:[%s3978_s3 + $0x6c] ss:$16 sps:$4 sm:$0xff]   ;;  %v2992_v47 = vld [vmem:[%s3978_s3 + $0xa0] ss:$16 sps:$4 sm:$0xff]  }
  0x10   :  { %235 = vmatprep.subr.bf16.mxu0 %v2942_v10  ;;  %v3000_v48 = vld [vmem:[%s3978_s3 + $0xc4] ss:$16 sps:$4 sm:$0xff]   ;;  %v2983_v49 = vld [vmem:[%s3978_s3 + $0x68] ss:$16 sps:$4 sm:$0xff]   ;;  %v2991_v50 = vld [vmem:[%s3978_s3 + $0x8c] ss:$16 sps:$4 sm:$0xff]  }
  0x11   :  { %2798 = vmatpush3.bf16.msra.mxu1 %v2957_v18  ;;  %v2998_v51 = vld [vmem:[%s3978_s3 + $0xc0] ss:$16 sps:$4 sm:$0xff]   ;;  %v2989_v52 = vld [vmem:[%s3978_s3 + $0x88] ss:$16 sps:$4 sm:$0xff]   ;;  %v2997_v53 = vld [vmem:[%s3978_s3 + $0xac] ss:$16 sps:$4 sm:$0xff]  }
  0x12   :  { %2799 = vmatprep.subr.bf16.mxu1 %v3181_v2  ;;  %v2995_v54 = vld [vmem:[%s3978_s3 + $0xa8] ss:$16 sps:$4 sm:$0xff]   ;;  %v3003_v55 = vld [vmem:[%s3978_s3 + $0xcc] ss:$16 sps:$4 sm:$0xff]   ;;  %v3006_v57 = vld [vmem:[%s3978_s3 + $0xe4] ss:$16 sps:$4 sm:$0xff]  }
  0x13   :  { %236 = vmatpush1.bf16.msra.mxu0 %v2944_v13  ;;  %v3001_v56 = vld [vmem:[%s3978_s3 + $0xc8] ss:$16 sps:$4 sm:$0xff]   ;;  %v3009_v58 = vld [vmem:[%s3978_s3 + $0xec] ss:$16 sps:$4 sm:$0xff]   ;;  %v3004_v59 = vld [vmem:[%s3978_s3 + $0xe0] ss:$16 sps:$4 sm:$0xff]  }
  0x14   :  { %237 = vmatprep.subr.bf16.mxu0 %v2945_v14  ;;  %v3007_v60 = vld [vmem:[%s3978_s3 + $0xe8] ss:$16 sps:$4 sm:$0xff]   ;;  %v3012_v61 = vld [vmem:[%s3980_s4 + $0x4] ss:$16 sps:$4 sm:$0xff]   ;;  %v3015_v62 = vld [vmem:[%s3980_s4 + $0xc] ss:$16 sps:$4 sm:$0xff]  }
  0x15   :  { %2800 = vmatpush3.bf16.msra.mxu1 %v2958_v23  ;;  %v82_v4 = vld [vmem:[%s3982_s2] sm:$0x7]  ;;  %v3460_v5 = vsub.s32 1, %v3451_v0  ;;  %v3479_v22 = vsub.s32 2, %v3451_v0  ;;  %v3019_v24 = vld [vmem:[%s3980_s4 + $0x28] ss:$16 sps:$4 sm:$0xff]  }
  0x16   :  { %2801 = vmatprep.subr.bf16.mxu1 %v3181_v2  ;;  %v87_v6 = vrot.slane %v82_v4, %v3454_v3  ;;  %v3016_v23 = vld [vmem:[%s3980_s4 + $0x20] ss:$16 sps:$4 sm:$0xff]   ;;  %vm1274_vm1 = vcmask 1043456   ;;  %vm1258_vm2 = vcmask 64512   ;;  %2518 = vst [vmem:[%s3989_s14 + $0x2] sm:$0x3f] %v3181_v2 }
  0x17   :  { %238 = vmatpush1.bf16.msra.mxu0 %v2947_v16  ;;  %v91_v8 = vrot.slane %v82_v4, %v3460_v5  ;;  %v3010_v16 = vld [vmem:[%s3980_s4] ss:$16 sps:$4 sm:$0xff]  }
  0x18   :  { %239 = vmatprep.subr.bf16.mxu0 %v2948_v17  ;;  %v3013_v17 = vld [vmem:[%s3980_s4 + $0x8] ss:$16 sps:$4 sm:$0xff]   ;;  %v3064_v63 = vld [vmem:[%s3981_s5 + $0x20] ss:$16 sps:$4 sm:$0xff]  }
  0x19   :  { %2802 = vmatpush3.bf16.msra.mxu1 %v2959_v27  ;;  %v3027_v27 = vld [vmem:[%s3980_s4 + $0x4c] ss:$16 sps:$4 sm:$0xff]  }
  0x1a   :  { %2803 = vmatprep.subr.bf16.mxu1 %v3181_v2 }
  0x1b   :  { %240 = vmatpush1.bf16.msra.mxu0 %v2950_v19  ;;  %v3018_v19 = vld [vmem:[%s3980_s4 + $0x24] ss:$16 sps:$4 sm:$0xff]  }
  0x1c   :  { %241 = vmatprep.subr.bf16.mxu0 %v2951_v20  ;;  %v3021_v20 = vld [vmem:[%s3980_s4 + $0x2c] ss:$16 sps:$4 sm:$0xff]  }
  0x1d   :  { %2804 = vmatpush3.bf16.msra.mxu1 %v2960_v30  ;;  %v3025_v30 = vld [vmem:[%s3980_s4 + $0x48] ss:$16 sps:$4 sm:$0xff]  }
  0x1e   :  { %2805 = vmatprep.subr.bf16.mxu1 %v3181_v2 }
  0x1f   :  { %242 = vmatpush1.bf16.msra.mxu0 %v2953_v21 }
  0x20   :  { %528 = vmatprep.subr.bf16.mxu0 %v2964_v25  ;;  %v95_v25 = vrot.slane %v82_v4, %v3479_v22  ;;  %v3067_v4 = vld [vmem:[%s3981_s5 + $0x28] ss:$16 sps:$4 sm:$0xff]  }
  0x21   :  { %2806 = vmatpush3.bf16.msra.mxu1 %v2961_v33  ;;  %v3030_v33 = vld [vmem:[%s3980_s4 + $0x64] ss:$16 sps:$4 sm:$0xff]  }
  0x22   :  { %260 = vmatmul.mubr.bf16.vlgmr.msra.gmra.mrb[0].mxu0 %v49_v26  ;;  %571 = vmatprep.subr.bf16.mxu1 %v2967_v34  ;;  %v3033_v34 = vld [vmem:[%s3980_s4 + $0x6c] ss:$16 sps:$4 sm:$0xff]  }
  0x23   :  { %529 = vmatpush1.bf16.msra.mxu0 %v2962_v28  ;;  %560 = vmatprep.mubr.bf16.mxu0 %v3180_v1 }
  0x24   :  { %530 = vmatprep.subr.bf16.mxu0 %v2970_v29  ;;  %2808 = vmatmul.mubr.bf16.vlgmr.msra.gmra.mrb[0].mxu1 %v49_v26  ;;  %v3024_v26 = vld [vmem:[%s3980_s4 + $0x44] ss:$16 sps:$4 sm:$0xff]   ;;  %v3022_v29 = vld [vmem:[%s3980_s4 + $0x40] ss:$16 sps:$4 sm:$0xff]  }
  0x25   :  { %572 = vmatpush1.bf16.msra.mxu1 %v2965_v37  ;;  %603 = vmatprep.mubr.bf16.mxu1 %v3180_v1 }
  0x26   :  { %573 = vmatprep.subr.bf16.mxu1 %v2973_v38  ;;  %v3028_v38 = vld [vmem:[%s3980_s4 + $0x60] ss:$16 sps:$4 sm:$0xff]  }
  0x27   :  { %531 = vmatpush1.bf16.msra.mxu0 %v2968_v31 }
  0x28   :  { %532 = vmatprep.subr.bf16.mxu0 %v2976_v32 }
  0x29   :  { %574 = vmatpush1.bf16.msra.mxu1 %v2971_v41  ;;  %v3036_v41 = vld [vmem:[%s3980_s4 + $0x84] ss:$16 sps:$4 sm:$0xff]  }
  0x2a   :  { %575 = vmatprep.subr.bf16.mxu1 %v2979_v42  ;;  %v3039_v42 = vld [vmem:[%s3980_s4 + $0x8c] ss:$16 sps:$4 sm:$0xff]  }
  0x2b   :  { %533 = vmatpush1.bf16.msra.mxu0 %v2974_v35 }
  0x2c   :  { %534 = vmatprep.subr.bf16.mxu0 %v2982_v36 }
  0x2d   :  { %576 = vmatpush1.bf16.msra.mxu1 %v2977_v45  ;;  %v3042_v45 = vld [vmem:[%s3980_s4 + $0xa4] ss:$16 sps:$4 sm:$0xff]  }
  0x2e   :  { %577 = vmatprep.subr.bf16.mxu1 %v2985_v46  ;;  %v3045_v46 = vld [vmem:[%s3980_s4 + $0xac] ss:$16 sps:$4 sm:$0xff]  }
  0x2f   :  { %535 = vmatpush1.bf16.msra.mxu0 %v2980_v39  ;;  %v3031_v39 = vld [vmem:[%s3980_s4 + $0x68] ss:$16 sps:$4 sm:$0xff]  }
  0x30   :  { %536 = vmatprep.subr.bf16.mxu0 %v2988_v40 }
  0x31   :  { %578 = vmatpush1.bf16.msra.mxu1 %v2983_v49  ;;  %v3048_v49 = vld [vmem:[%s3980_s4 + $0xc4] ss:$16 sps:$4 sm:$0xff]  }
  0x32   :  { %579 = vmatprep.subr.bf16.mxu1 %v2991_v50  ;;  %v3051_v50 = vld [vmem:[%s3980_s4 + $0xcc] ss:$16 sps:$4 sm:$0xff]  }
  0x33   :  { %537 = vmatpush1.bf16.msra.mxu0 %v2986_v43  ;;  %v3034_v43 = vld [vmem:[%s3980_s4 + $0x80] ss:$16 sps:$4 sm:$0xff]  }
  0x34   :  { %538 = vmatprep.subr.bf16.mxu0 %v2994_v44  ;;  %v3037_v44 = vld [vmem:[%s3980_s4 + $0x88] ss:$16 sps:$4 sm:$0xff]  }
  0x35   :  { %580 = vmatpush1.bf16.msra.mxu1 %v2989_v52  ;;  %v3049_v52 = vld [vmem:[%s3980_s4 + $0xc8] ss:$16 sps:$4 sm:$0xff]  }
  0x36   :  { %581 = vmatprep.subr.bf16.mxu1 %v2997_v53  ;;  %v3054_v53 = vld [vmem:[%s3980_s4 + $0xe4] ss:$16 sps:$4 sm:$0xff]  }
  0x37   :  { %539 = vmatpush1.bf16.msra.mxu0 %v2992_v47  ;;  %v3040_v47 = vld [vmem:[%s3980_s4 + $0xa0] ss:$16 sps:$4 sm:$0xff]  }
  0x38   :  { %540 = vmatprep.subr.bf16.mxu0 %v3000_v48  ;;  %v3043_v48 = vld [vmem:[%s3980_s4 + $0xa8] ss:$16 sps:$4 sm:$0xff]  }
  0x39   :  { %582 = vmatpush1.bf16.msra.mxu1 %v2995_v54  ;;  %v3057_v54 = vld [vmem:[%s3980_s4 + $0xec] ss:$16 sps:$4 sm:$0xff]  }
  0x3a   :  { %583 = vmatprep.subr.bf16.mxu1 %v3003_v55  ;;  %v3052_v55 = vld [vmem:[%s3980_s4 + $0xe0] ss:$16 sps:$4 sm:$0xff]  }
  0x3b   :  { %541 = vmatpush1.bf16.msra.mxu0 %v2998_v51  ;;  %v3046_v51 = vld [vmem:[%s3980_s4 + $0xc0] ss:$16 sps:$4 sm:$0xff]  }
  0x3c   :  { %542 = vmatprep.subr.bf16.mxu0 %v3006_v57  ;;  %v3060_v57 = vld [vmem:[%s3981_s5 + $0x4] ss:$16 sps:$4 sm:$0xff]  }
  0x3d   :  { %584 = vmatpush1.bf16.msra.mxu1 %v3001_v56  ;;  %v3055_v56 = vld [vmem:[%s3980_s4 + $0xe8] ss:$16 sps:$4 sm:$0xff]  }
  0x3e   :  { %585 = vmatprep.subr.bf16.mxu1 %v3009_v58  ;;  %v3063_v58 = vld [vmem:[%s3981_s5 + $0xc] ss:$16 sps:$4 sm:$0xff]  }
  0x3f   :  { %543 = vmatpush1.bf16.msra.mxu0 %v3004_v59  ;;  %v3058_v59 = vld [vmem:[%s3981_s5] ss:$16 sps:$4 sm:$0xff]  }
  0x40   :  { %828 = vmatprep.subr.bf16.mxu0 %v3012_v61  ;;  %v3066_v61 = vld [vmem:[%s3981_s5 + $0x24] ss:$16 sps:$4 sm:$0xff]  }
  0x41   :  { %586 = vmatpush1.bf16.msra.mxu1 %v3007_v60  ;;  %v3061_v60 = vld [vmem:[%s3981_s5 + $0x8] ss:$16 sps:$4 sm:$0xff]  }
  0x42   :  { %871 = vmatprep.subr.bf16.mxu1 %v3015_v62  ;;  %v3069_v62 = vld [vmem:[%s3981_s5 + $0x2c] ss:$16 sps:$4 sm:$0xff]  }
  0xf5   :  { %v261_v7 = vpop.f32.mrb[0].mxu0 }
  0xf6   :  { %v263_v9 = vpop.f32.mrb[1].mxu0  ;;  %v262_v11 = vadd.f32 %v261_v7, %v87_v6  ;;  %v3070_v7 = vld [vmem:[%s3981_s5 + $0x40] ss:$16 sps:$4 sm:$0xff]  }
  0xf7   :  { %v265_v10 = vpop.f32.mrb[2].mxu0  ;;  %v264_v14 = vadd.f32 %v263_v9, %v91_v8  ;;  %v304_v28 = vpop.f32.mrb[0].mxu1  ;;  %v3078_v9 = vld [vmem:[%s3981_s5 + $0x64] ss:$16 sps:$4 sm:$0xff]  }
  0xf8   :  { %v266_v12 = vadd.f32 %v265_v10, %v87_v6  ;;  %v267_v13 = vpop.f32.mrb[3].mxu0  ;;  %v305_v31 = vadd.f32 %v304_v28, %v95_v25  ;;  %v2809_v32 = vpop.f32.mrb[1].mxu1  ;;  %v3075_v6 = vld [vmem:[%s3981_s5 + $0x4c] ss:$16 sps:$4 sm:$0xff]   ;;  %v3100_v28 = vld [vmem:[%s3981_s5 + $0xe0] ss:$16 sps:$4 sm:$0xff]  }
  0xf9   :  { %v268_v15 = vadd.f32 %v267_v13, %v91_v8  ;;  %v307_v35 = vpop.f32.mrb[2].mxu1  ;;  %v3073_v8 = vld [vmem:[%s3981_s5 + $0x48] ss:$16 sps:$4 sm:$0xff]   ;;  %v3081_v10 = vld [vmem:[%s3981_s5 + $0x6c] ss:$16 sps:$4 sm:$0xff]  }
  0xfa   :  { %v311_v18 = vpack.c.bf16 %v266_v12, %v262_v11  ;;  %v308_v36 = vadd.f32 %v307_v35, %v95_v25  ;;  %v2810_v37 = vpop.f32.mrb[3].mxu1  ;;  %v3076_v11 = vld [vmem:[%s3981_s5 + $0x60] ss:$16 sps:$4 sm:$0xff]   ;;  %v3079_v12 = vld [vmem:[%s3981_s5 + $0x68] ss:$16 sps:$4 sm:$0xff]  }
  0xfb   :  { %v3476_v21 = vpack.c.bf16 %v268_v15, %v264_v14  ;;  %v3084_v13 = vld [vmem:[%s3981_s5 + $0x84] ss:$16 sps:$4 sm:$0xff]   ;;  %v3087_v14 = vld [vmem:[%s3981_s5 + $0x8c] ss:$16 sps:$4 sm:$0xff]   ;;  %v3082_v15 = vld [vmem:[%s3981_s5 + $0x80] ss:$16 sps:$4 sm:$0xff]  }
  0xfc   :  { %561 = vmatmul.mubr.bf16.vlgmr.msra.gmra.mrb[4].mxu0 %v311_v18  ;;  %604 = vmatmul.mubr.bf16.vlgmr.msra.gmra.mrb[4].mxu1 %v311_v18  ;;  %v3514_v40 = vpack.c.bf16 %v308_v36, %v305_v31  ;;  %v3093_v18 = vld [vmem:[%s3981_s5 + $0xac] ss:$16 sps:$4 sm:$0xff]   ;;  %v3097_v25 = vld [vmem:[%s3981_s5 + $0xc8] ss:$16 sps:$4 sm:$0xff]  }
  0xfd   :  { %829 = vmatpush1.bf16.msra.mxu0 %v3010_v16  ;;  %872 = vmatpush1.bf16.msra.mxu1 %v3013_v17  ;;  %v3085_v16 = vld [vmem:[%s3981_s5 + $0x88] ss:$16 sps:$4 sm:$0xff]   ;;  %v3090_v17 = vld [vmem:[%s3981_s5 + $0xa4] ss:$16 sps:$4 sm:$0xff]  }
  0xfe   :  { %830 = vmatprep.subr.bf16.mxu0 %v3018_v19  ;;  %873 = vmatprep.subr.bf16.mxu1 %v3021_v20  ;;  %v3088_v19 = vld [vmem:[%s3981_s5 + $0xa0] ss:$16 sps:$4 sm:$0xff]   ;;  %v3091_v20 = vld [vmem:[%s3981_s5 + $0xa8] ss:$16 sps:$4 sm:$0xff]  }
  0xff   :  { %860 = vmatprep.mubr.bf16.mxu0 %v3180_v1  ;;  %903 = vmatprep.mubr.bf16.mxu1 %v3180_v1 }
 0x101   :  { %831 = vmatpush1.bf16.msra.mxu0 %v3016_v23  ;;  %874 = vmatpush1.bf16.msra.mxu1 %v3019_v24  ;;  %v3099_v23 = vld [vmem:[%s3981_s5 + $0xcc] ss:$16 sps:$4 sm:$0xff]   ;;  %v3094_v24 = vld [vmem:[%s3981_s5 + $0xc0] ss:$16 sps:$4 sm:$0xff]  }
 0x102   :  { %832 = vmatprep.subr.bf16.mxu0 %v3024_v26  ;;  %875 = vmatprep.subr.bf16.mxu1 %v3027_v27  ;;  %v3102_v26 = vld [vmem:[%s3981_s5 + $0xe4] ss:$16 sps:$4 sm:$0xff]   ;;  %v3105_v27 = vld [vmem:[%s3981_s5 + $0xec] ss:$16 sps:$4 sm:$0xff]  }
 0x105   :  { %833 = vmatpush1.bf16.msra.mxu0 %v3022_v29  ;;  %876 = vmatpush1.bf16.msra.mxu1 %v3025_v30  ;;  %v3103_v29 = vld [vmem:[%s3981_s5 + $0xe8] ss:$16 sps:$4 sm:$0xff]   ;;  %v346_v30 = vld [vmem:[%s3983_s6] sm:$0xf] }
 0x106   :  { %834 = vmatprep.subr.bf16.mxu0 %v3030_v33  ;;  %877 = vmatprep.subr.bf16.mxu1 %v3033_v34  ;;  %v3676_v31 = vrot.slane %v346_v30, %v3460_v5 }
 0x109   :  { %835 = vmatpush1.bf16.msra.mxu0 %v3028_v38  ;;  %878 = vmatpush1.bf16.msra.mxu1 %v3031_v39 }
 0x10a   :  { %836 = vmatprep.subr.bf16.mxu0 %v3036_v41  ;;  %879 = vmatprep.subr.bf16.mxu1 %v3039_v42  ;;  %v646_v41 = vld [vmem:[%s3984_s7] sm:$0xf] }
 0x10b   :  { %v651_v42 = vrot.slane %v646_v41, %v3454_v3 }
 0x10d   :  { %837 = vmatpush1.bf16.msra.mxu0 %v3034_v43  ;;  %880 = vmatpush1.bf16.msra.mxu1 %v3037_v44  ;;  %v659_v43 = vrot.slane %v646_v41, %v3479_v22  ;;  %v655_v44 = vrot.slane %v646_v41, %v3460_v5 }
 0x10e   :  { %838 = vmatprep.subr.bf16.mxu0 %v3042_v45  ;;  %881 = vmatprep.subr.bf16.mxu1 %v3045_v46 }
 0x111   :  { %839 = vmatpush1.bf16.msra.mxu0 %v3040_v47  ;;  %882 = vmatpush1.bf16.msra.mxu1 %v3043_v48  ;;  %v3692_v47 = vsub.s32 3, %v3451_v0 }
 0x112   :  { %840 = vmatprep.subr.bf16.mxu0 %v3048_v49  ;;  %883 = vmatprep.subr.bf16.mxu1 %v3051_v50 }
 0x115   :  { %841 = vmatpush1.bf16.msra.mxu0 %v3046_v51  ;;  %884 = vmatpush1.bf16.msra.mxu1 %v3049_v52  ;;  %v351_v52 = vrot.slane %v346_v30, %v3454_v3 }
 0x116   :  { %842 = vmatprep.subr.bf16.mxu0 %v3054_v53  ;;  %885 = vmatprep.subr.bf16.mxu1 %v3057_v54  ;;  %v359_v53 = vrot.slane %v346_v30, %v3479_v22 }
 0x119   :  { %843 = vmatpush1.bf16.msra.mxu0 %v3052_v55  ;;  %886 = vmatpush1.bf16.msra.mxu1 %v3055_v56 }
 0x11a   :  { %1128 = vmatprep.subr.bf16.mxu0 %v3060_v57  ;;  %1171 = vmatprep.subr.bf16.mxu1 %v3063_v58 }
 0x11c   :  { %861 = vmatmul.mubr.bf16.vlgmr.msra.gmra.mrb[8].mxu0 %v3476_v21  ;;  %904 = vmatmul.mubr.bf16.vlgmr.msra.gmra.mrb[8].mxu1 %v3476_v21  ;;  %v3096_v21 = vld [vmem:[%s3981_s5 + $0xc4] ss:$16 sps:$4 sm:$0xff]  }
 0x11d   :  { %1129 = vmatpush1.bf16.msra.mxu0 %v3058_v59  ;;  %1172 = vmatpush1.bf16.msra.mxu1 %v3061_v60  ;;  %v663_v59 = vrot.slane %v646_v41, %v3692_v47 }
 0x11e   :  { %1160 = vmatprep.mubr.bf16.mxu0 %v3180_v1  ;;  %1203 = vmatprep.mubr.bf16.mxu1 %v3180_v1  ;;  %v3072_v1 = vld [vmem:[%s3981_s5 + $0x44] ss:$16 sps:$4 sm:$0xff]  }
 0x11f   :  { %1130 = vmatprep.subr.bf16.mxu0 %v3066_v61  ;;  %1173 = vmatprep.subr.bf16.mxu1 %v3069_v62 }
 0x121   :  { %1131 = vmatpush1.bf16.msra.mxu0 %v3064_v63  ;;  %1174 = vmatpush1.bf16.msra.mxu1 %v3067_v4 }
 0x122   :  { %1132 = vmatprep.subr.bf16.mxu0 %v3072_v1  ;;  %1175 = vmatprep.subr.bf16.mxu1 %v3075_v6  ;;  %v363_v6 = vrot.slane %v346_v30, %v3692_v47 }
 0x125   :  { %1133 = vmatpush1.bf16.msra.mxu0 %v3070_v7  ;;  %1176 = vmatpush1.bf16.msra.mxu1 %v3073_v8 }
 0x126   :  { %1134 = vmatprep.subr.bf16.mxu0 %v3078_v9  ;;  %1177 = vmatprep.subr.bf16.mxu1 %v3081_v10 }
 0x129   :  { %1135 = vmatpush1.bf16.msra.mxu0 %v3076_v11  ;;  %1178 = vmatpush1.bf16.msra.mxu1 %v3079_v12 }
 0x12a   :  { %1136 = vmatprep.subr.bf16.mxu0 %v3084_v13  ;;  %1179 = vmatprep.subr.bf16.mxu1 %v3087_v14 }
 0x12d   :  { %1137 = vmatpush1.bf16.msra.mxu0 %v3082_v15  ;;  %1180 = vmatpush1.bf16.msra.mxu1 %v3085_v16 }
 0x12e   :  { %1138 = vmatprep.subr.bf16.mxu0 %v3090_v17  ;;  %1181 = vmatprep.subr.bf16.mxu1 %v3093_v18 }
 0x131   :  { %1139 = vmatpush1.bf16.msra.mxu0 %v3088_v19  ;;  %1182 = vmatpush1.bf16.msra.mxu1 %v3091_v20 }
 0x132   :  { %1140 = vmatprep.subr.bf16.mxu0 %v3096_v21  ;;  %1183 = vmatprep.subr.bf16.mxu1 %v3099_v23 }
 0x135   :  { %1141 = vmatpush1.bf16.msra.mxu0 %v3094_v24  ;;  %1184 = vmatpush1.bf16.msra.mxu1 %v3097_v25 }
 0x136   :  { %1142 = vmatprep.subr.bf16.mxu0 %v3102_v26  ;;  %1185 = vmatprep.subr.bf16.mxu1 %v3105_v27  ;;  %v946_v27 = vld [vmem:[%s3985_s8] sm:$0xf] }
 0x137   :  { %v955_v30 = vrot.slane %v946_v27, %v3460_v5 }
 0x139   :  { %1143 = vmatpush1.bf16.msra.mxu0 %v3100_v28  ;;  %1186 = vmatpush1.bf16.msra.mxu1 %v3103_v29  ;;  %v951_v28 = vrot.slane %v946_v27, %v3454_v3  ;;  %v959_v29 = vrot.slane %v946_v27, %v3479_v22 }
 0x13a   :  { %2811 = vmatprep.subr.bf16.mxu1 %v3181_v2  ;;  %2835 = vmatprep.subr.bf16.mxu0 %v3181_v2 }
 0x13c   :  { %1161 = vmatmul.mubr.bf16.vlgmr.msra.gmra.mrb[12].mxu0 %v3514_v40  ;;  %1204 = vmatmul.mubr.bf16.vlgmr.msra.gmra.mrb[12].mxu1 %v3514_v40 }
 0x13d   :  { %2813 = vmatprep.mubr.msk.bf16.mxu1 %vm3182_vm0, %v3181_v2  ;;  %2837 = vmatprep.mubr.msk.bf16.mxu0 %vm3182_vm0, %v3181_v2 }
 0x1cf   :  { %v562_v32 = vpop.f32.mrb[4].mxu0  ;;  %v605_v33 = vpop.f32.mrb[4].mxu1 }
 0x1d0   :  { %v564_v34 = vpop.f32.mrb[5].mxu0  ;;  %v607_v35 = vpop.f32.mrb[5].mxu1  ;;  %v563_v0 = vadd.f32 %v562_v32, %v351_v52  ;;  %v606_v62 = vadd.f32 %v605_v33, %v359_v53 }
 0x1d1   :  { %v3679_v36 = vadd.f32 %v564_v34, %v3676_v31  ;;  %v566_v37 = vpop.f32.mrb[6].mxu0  ;;  %v3681_v38 = vpop.f32.mrb[6].mxu1  ;;  %v608_v8 = vadd.f32 %v607_v35, %v363_v6 }
 0x1d2   :  { %v568_v39 = vpop.f32.mrb[7].mxu0  ;;  %v3683_v40 = vpop.f32.mrb[7].mxu1  ;;  %v1214_v4 = vpack.c.bf16 %v563_v0, %v563_v0  ;;  %v1420_v1 = vpack.c.bf16 %v606_v62, %v606_v62  ;;  %v567_v12 = vadd.f32 %v566_v37, %v351_v52  ;;  %v610_v20 = vadd.f32 %v3681_v38, %v359_v53 }
 0x1d3   :  { %v1522_v10 = vpack.c.bf16 %v608_v8, %v608_v8  ;;  %v569_v16 = vadd.f32 %v568_v39, %v3676_v31  ;;  %v612_v25 = vadd.f32 %v3683_v40, %v363_v6  ;;  %v963_v31 = vrot.slane %v946_v27, %v3692_v47 }
 0x1d4   :  { %v1624_v14 = vpack.c.bf16 %v567_v12, %v567_v12  ;;  %v1828_v23 = vpack.c.bf16 %v610_v20, %v610_v20 }
 0x1d5   :  { %v1726_v18 = vpack.c.bf16 %v569_v16, %v569_v16  ;;  %v1930_v26 = vpack.c.bf16 %v612_v25, %v612_v25 }
 0x1ef   :  { %v862_v45 = vpop.f32.mrb[8].mxu0  ;;  %v905_v46 = vpop.f32.mrb[8].mxu1 }
 0x1f0   :  { %v863_v48 = vadd.f32 %v862_v45, %v651_v42  ;;  %v906_v49 = vadd.f32 %v905_v46, %v659_v43  ;;  %v864_v50 = vpop.f32.mrb[9].mxu0  ;;  %v907_v51 = vpop.f32.mrb[9].mxu1 }
 0x1f1   :  { %v3696_v54 = vadd.f32 %v864_v50, %v655_v44  ;;  %v866_v55 = vpop.f32.mrb[10].mxu0  ;;  %v909_v56 = vpop.f32.mrb[10].mxu1  ;;  %v908_v63 = vadd.f32 %v907_v51, %v663_v59 }
 0x1f2   :  { %v1215_v57 = vpack.c.bf16 %v863_v48, %v863_v48  ;;  %v1421_v58 = vpack.c.bf16 %v906_v49, %v906_v49  ;;  %v868_v60 = vpop.f32.mrb[11].mxu0  ;;  %v911_v61 = vpop.f32.mrb[11].mxu1  ;;  %v867_v9 = vadd.f32 %v866_v55, %v651_v42  ;;  %v910_v17 = vadd.f32 %v909_v56, %v659_v43 }
 0x1f3   :  { %v1523_v7 = vpack.c.bf16 %v908_v63, %v908_v63  ;;  %v869_v13 = vadd.f32 %v868_v60, %v655_v44  ;;  %v912_v21 = vadd.f32 %v911_v61, %v663_v59 }
 0x1f4   :  { %2812 = vmatpush3.bf16.xpose.msra.mxu1 %v1215_v57  ;;  %2836 = vmatpush3.bf16.xpose.msra.mxu0 %v1421_v58  ;;  %v1625_v11 = vpack.c.bf16 %v867_v9, %v867_v9  ;;  %v1829_v19 = vpack.c.bf16 %v910_v17, %v910_v17 }
 0x1f5   :  { %2847 = vmatprep.subr.bf16.mxu0 %v3181_v2  ;;  %2817 = vmatprep.subr.bf16.mxu1 %v3181_v2  ;;  %v1727_v15 = vpack.c.bf16 %v869_v13, %v869_v13  ;;  %v1931_v24 = vpack.c.bf16 %v912_v21, %v912_v21 }
 0x1fb   :  { %2814 = vmatmul.mubr.bf16.vlgmr.msra.gmra.mrb[16].mxu1 %v1214_v4  ;;  %2838 = vmatmul.mubr.bf16.vlgmr.msra.gmra.mrb[16].mxu0 %v1420_v1 }
 0x1fc   :  { %2848 = vmatpush3.bf16.xpose.msra.mxu0 %v1523_v7  ;;  %2849 = vmatprep.mubr.msk.bf16.mxu0 %vm3182_vm0, %v3181_v2 }
 0x1fd   :  { %2859 = vmatprep.subr.bf16.mxu0 %v3181_v2  ;;  %2819 = vmatprep.mubr.msk.bf16.mxu1 %vm3182_vm0, %v3181_v2 }
 0x203   :  { %2850 = vmatmul.mubr.bf16.vlgmr.msra.gmra.mrb[20].mxu0 %v1522_v10 }
 0x204   :  { %2860 = vmatpush3.bf16.xpose.msra.mxu0 %v1625_v11  ;;  %2861 = vmatprep.mubr.msk.bf16.mxu0 %vm3182_vm0, %v3181_v2 }
 0x205   :  { %2871 = vmatprep.subr.bf16.mxu0 %v3181_v2 }
 0x20b   :  { %2862 = vmatmul.mubr.bf16.vlgmr.msra.gmra.mrb[24].mxu0 %v1624_v14 }
 0x20c   :  { %2872 = vmatpush3.bf16.xpose.msra.mxu0 %v1727_v15  ;;  %2873 = vmatprep.mubr.msk.bf16.mxu0 %vm3182_vm0, %v3181_v2 }
 0x20d   :  { %2883 = vmatprep.subr.bf16.mxu0 %v3181_v2 }
 0x20f   :  { %v1162_v32 = vpop.f32.mrb[12].mxu0  ;;  %v1205_v33 = vpop.f32.mrb[12].mxu1 }
 0x210   :  { %v1163_v34 = vadd.f32 %v1162_v32, %v951_v28  ;;  %v1206_v35 = vadd.f32 %v1205_v33, %v959_v29  ;;  %v1164_v37 = vpop.f32.mrb[13].mxu0  ;;  %v1207_v38 = vpop.f32.mrb[13].mxu1 }
 0x211   :  { %v1165_v39 = vadd.f32 %v1164_v37, %v955_v30  ;;  %v1208_v40 = vadd.f32 %v1207_v38, %v963_v31  ;;  %v1166_v41 = vpop.f32.mrb[14].mxu0  ;;  %v1209_v42 = vpop.f32.mrb[14].mxu1 }
 0x212   :  { %v1216_v43 = vpack.c.bf16 %v1163_v34, %v1163_v34  ;;  %v1422_v44 = vpack.c.bf16 %v1206_v35, %v1206_v35  ;;  %v1167_v3 = vadd.f32 %v1166_v41, %v951_v28  ;;  %v1210_v45 = vadd.f32 %v1209_v42, %v959_v29  ;;  %v1168_v22 = vpop.f32.mrb[15].mxu0  ;;  %v1211_v46 = vpop.f32.mrb[15].mxu1 }
 0x213   :  { %2874 = vmatmul.mubr.bf16.vlgmr.msra.gmra.mrb[28].mxu0 %v1726_v18  ;;  %v1320_v5 = vpack.c.bf16 %v1165_v39, %v1165_v39  ;;  %v1524_v48 = vpack.c.bf16 %v1208_v40, %v1208_v40  ;;  %v1169_v47 = vadd.f32 %v1168_v22, %v955_v30  ;;  %v1212_v49 = vadd.f32 %v1211_v46, %v963_v31 }
 0x214   :  { %2884 = vmatpush3.bf16.xpose.msra.mxu0 %v1829_v19  ;;  %2885 = vmatprep.mubr.msk.bf16.mxu0 %vm3182_vm0, %v3181_v2  ;;  %v1276_v50 = vsel %vm1274_vm1, %v1216_v43, 0  ;;  %v3730_v51 = vsel %vm1274_vm1, %v1422_v44, 0  ;;  %v1626_v52 = vpack.c.bf16 %v1167_v3, %v1167_v3  ;;  %v1830_v53 = vpack.c.bf16 %v1210_v45, %v1210_v45 }
 0x215   :  { %2895 = vmatprep.subr.bf16.mxu0 %v3181_v2  ;;  %v3733_v55 = vsel %vm1274_vm1, %v1320_v5, 0  ;;  %v3736_v56 = vsel %vm1274_vm1, %v1524_v48, 0  ;;  %v1728_v57 = vpack.c.bf16 %v1169_v47, %v1169_v47  ;;  %v1932_v58 = vpack.c.bf16 %v1212_v49, %v1212_v49  ;;  %2818 = vmatpush3.bf16.msra.mxu1 %v1276_v50 }
 0x216   :  { %v3739_v59 = vsel %vm1274_vm1, %v1626_v52, 0  ;;  %v3742_v60 = vsel %vm1274_vm1, %v1830_v53, 0  ;;  %2823 = vmatprep.subr.bf16.mxu1 %v3181_v2  ;;  %v1319_v5 = vpack.c.bf16 %v3696_v54, %v3696_v54  ;;  %v1318_v48 = vpack.c.bf16 %v3679_v36, %v3679_v36 }
 0x217   :  { %v3746_v61 = vsel %vm1274_vm1, %v1728_v57, 0  ;;  %v3749_v0 = vsel %vm1274_vm1, %v1932_v58, 0 }
 0x21b   :  { %2886 = vmatmul.mubr.bf16.vlgmr.msra.gmra.mrb[32].mxu0 %v1828_v23 }
 0x21c   :  { %2896 = vmatpush3.bf16.xpose.msra.mxu0 %v1931_v24  ;;  %2897 = vmatprep.mubr.msk.bf16.mxu0 %vm3182_vm0, %v3181_v2 }
 0x223   :  { %2898 = vmatmul.mubr.bf16.vlgmr.msra.gmra.mrb[36].mxu0 %v1930_v26 }
 0x2ce   :  { %v1251_v62 = vpop.f32.mrb[16].mxu1  ;;  %v3751_v63 = vpop.f32.mrb[16].mxu0 }
 0x2cf   :  { %v1257_v4 = vmul.f32 0.35355338, %v1251_v62  ;;  %v2815_v1 = vpop.f32.mrb[17].mxu1  ;;  %v2839_v6 = vpop.f32.mrb[17].mxu0  ;;  %v1463_v62 = vmul.f32 0.35355338, %v3751_v63 }
 0x2d0   :  { %v1254_v7 = vpop.f32.mrb[18].mxu1  ;;  %v1460_v8 = vpop.f32.mrb[18].mxu0 }
 0x2d1   :  { %v2816_v9 = vpop.f32.mrb[19].mxu1  ;;  %v2840_v10 = vpop.f32.mrb[19].mxu0  ;;  %v1259_v11 = vsel %vm1258_vm2, %v1257_v4, -inf  ;;  %v1464_v1 = vsel %vm1258_vm2, %v1463_v62, -inf }
 0x2d2   :  { %1260 = vmax.xlane.f32.xlu0 %v1259_v11 }
 0x2d6   :  { %v1559_v12 = vpop.f32.mrb[20].mxu0 }
 0x2d7   :  { %v2851_v13 = vpop.f32.mrb[21].mxu0  ;;  %v1565_v38 = vmul.f32 0.35355338, %v1559_v12 }
 0x2d8   :  { %v1562_v14 = vpop.f32.mrb[22].mxu0 }
 0x2d9   :  { %v2852_v15 = vpop.f32.mrb[23].mxu0  ;;  %v1566_v41 = vsel %vm1258_vm2, %v1565_v38, -inf }
 0x2de   :  { %v1661_v16 = vpop.f32.mrb[24].mxu0 }
 0x2df   :  { %v2863_v17 = vpop.f32.mrb[25].mxu0 }
 0x2e0   :  { %v1664_v18 = vpop.f32.mrb[26].mxu0 }
 0x2e1   :  { %v2864_v19 = vpop.f32.mrb[27].mxu0 }
 0x2e6   :  { %v1763_v20 = vpop.f32.mrb[28].mxu0 }
 0x2e7   :  { %v2875_v21 = vpop.f32.mrb[29].mxu0  ;;  %v1769_v40 = vmul.f32 0.35355338, %v1763_v20 }
 0x2e8   :  { %v1766_v23 = vpop.f32.mrb[30].mxu0 }
 0x2e9   :  { %v2876_v24 = vpop.f32.mrb[31].mxu0  ;;  %v1770_v43 = vsel %vm1258_vm2, %v1769_v40, -inf }
 0x2ee   :  { %v1865_v25 = vpop.f32.mrb[32].mxu0 }
 0x2ef   :  { %v2887_v26 = vpop.f32.mrb[33].mxu0  ;;  %v1871_v6 = vmul.f32 0.35355338, %v1865_v25 }
 0x2f0   :  { %v1868_v27 = vpop.f32.mrb[34].mxu0 }
 0x2f1   :  { %v2888_v28 = vpop.f32.mrb[35].mxu0  ;;  %v1872_v8 = vsel %vm1258_vm2, %v1871_v6, -inf }
 0x2f6   :  { %v1967_v29 = vpop.f32.mrb[36].mxu0 }
 0x2f7   :  { %v2899_v30 = vpop.f32.mrb[37].mxu0  ;;  %v1973_v42 = vmul.f32 0.35355338, %v1967_v29 }
 0x2f8   :  { %v1970_v31 = vpop.f32.mrb[38].mxu0 }
 0x2f9   :  { %v2900_v32 = vpop.f32.mrb[39].mxu0  ;;  %v1974_v44 = vsel %vm1258_vm2, %v1973_v42, -inf }
 0x35f   :  { %v1261_v33 = vpop.xlane.xlu0 %1260 }
 0x360   :  { %v1262_v34 = vsub.f32 %v1257_v4, %v1261_v33 }
 0x362   :  { %v1263_v35 = vmul.f32 1.442695, %v1262_v34 }
 0x364   :  { %3146 = vpow2.f32 %v1263_v35 }
 0x36e   :  { %v3147_v37 = vpop.eup %3146 }
 0x36f   :  { %v1265_v39 = vsel %vm1258_vm2, %v3147_v37, 0.0 }
 0x370   :  { %1266 = vadd.xlane.f32.xlu0 %v1265_v39 }
 0x374   :  { %1567 = vmax.xlane.f32.xlu0 %v1566_v41 }
 0x378   :  { %1771 = vmax.xlane.f32.xlu0 %v1770_v43 }
 0x37c   :  { %1975 = vmax.xlane.f32.xlu0 %v1974_v44 }
 0x3fd   :  { %v1267_v3 = vpop.xlane.xlu0 %1266 }
 0x3fe   :  { %3148 = vrcp.f32 %v1267_v3 }
 0x401   :  { %v1568_v9 = vpop.xlane.xlu0 %1567 }
 0x402   :  { %v1569_v11 = vsub.f32 %v1565_v38, %v1568_v9 }
 0x404   :  { %v1570_v13 = vmul.f32 1.442695, %v1569_v11 }
 0x405   :  { %v1772_v10 = vpop.xlane.xlu0 %1771 }
 0x406   :  { %v1773_v14 = vsub.f32 %v1769_v40, %v1772_v10 }
 0x408   :  { %v3149_v45 = vpop.eup %3148  ;;  %v1774_v19 = vmul.f32 1.442695, %v1773_v14  ;;  %v3111_v14 = vld [vmem:[%s3986_s9 + $0x10] sm:$0xff]  }
 0x409   :  { %v1269_v22 = vmul.f32 %v3149_v45, %v3147_v37  ;;  %v1976_v17 = vpop.xlane.xlu0 %1975 }
 0x40a   :  { %v1977_v20 = vsub.f32 %v1973_v42, %v1976_v17  ;;  %v3113_v17 = vld [vmem:[%s3986_s9 + $0x18] sm:$0xff]  }
 0x40b   :  { %v1270_v46 = vpack.c.bf16 %v1269_v22, %v1269_v22 }
 0x40c   :  { %v1978_v25 = vmul.f32 1.442695, %v1977_v20  ;;  %v3117_v20 = vld [vmem:[%s3986_s9 + $0x80] sm:$0xff]  }
 0x40d   :  { %2820 = vmatmul.mubr.msk.bf16.vlgmr.msra.gmra.mrb[20].mxu1 %vm1258_vm2, %v1270_v46 }
 0x40e   :  { %2824 = vmatpush3.bf16.xpose.msra.mxu1 %v1319_v5  ;;  %2825 = vmatprep.mubr.msk.bf16.mxu1 %vm3182_vm0, %v3181_v2 }
 0x40f   :  { %2829 = vmatprep.subr.bf16.mxu1 %v3181_v2 }
 0x415   :  { %2826 = vmatmul.mubr.bf16.vlgmr.msra.gmra.mrb[24].mxu1 %v1318_v48 }
 0x416   :  { %2830 = vmatpush3.bf16.msra.mxu1 %v3733_v55  ;;  %2831 = vmatprep.mubr.msk.bf16.mxu1 %vm3182_vm0, %v3181_v2  ;;  %v1667_v55 = vmul.f32 0.35355338, %v1661_v16 }
 0x417   :  { %2841 = vmatprep.subr.bf16.mxu1 %v3181_v2 }
 0x418   :  { %v1668_v7 = vsel %vm1258_vm2, %v1667_v55, -inf }
 0x4e0   :  { %v3770_v54 = vpop.f32.mrb[20].mxu1 }
 0x4e1   :  { %v2821_v47 = vpop.f32.mrb[21].mxu1 }
 0x4e2   :  { %v1315_v49 = vpop.f32.mrb[22].mxu1 }
 0x4e3   :  { %v2822_v50 = vpop.f32.mrb[23].mxu1 }
 0x4e8   :  { %v1355_v52 = vpop.f32.mrb[24].mxu1 }
 0x4e9   :  { %v1361_v53 = vmul.f32 0.35355338, %v1355_v52  ;;  %v2827_v57 = vpop.f32.mrb[25].mxu1 }
 0x4ea   :  { %v1358_v58 = vpop.f32.mrb[26].mxu1 }
 0x4eb   :  { %v2828_v36 = vpop.f32.mrb[27].mxu1  ;;  %v1362_v4 = vsel %vm1258_vm2, %v1361_v53, -inf }
 0x4ec   :  { %1363 = vmax.xlane.f32.xlu1 %v1362_v4 }
 0x4f0   :  { %1465 = vmax.xlane.f32.xlu1 %v1464_v1 }
 0x4f4   :  { %1669 = vmax.xlane.f32.xlu1 %v1668_v7 }
 0x4f8   :  { %1873 = vmax.xlane.f32.xlu1 %v1872_v8 }
 0x579   :  { %v1364_v12 = vpop.xlane.xlu1 %1363 }
 0x57a   :  { %v1365_v63 = vsub.f32 %v1361_v53, %v1364_v12  ;;  %v3107_v12 = vld [vmem:[%s3986_s9] sm:$0xff]  }
 0x57c   :  { %v1366_v15 = vmul.f32 1.442695, %v1365_v63  ;;  %v3109_v63 = vld [vmem:[%s3986_s9 + $0x8] sm:$0xff]  }
 0x57d   :  { %v1466_v16 = vpop.xlane.xlu1 %1465 }
 0x57e   :  { %3150 = vpow2.f32 %v1366_v15  ;;  %v1467_v18 = vsub.f32 %v1463_v62, %v1466_v16  ;;  %v3112_v15 = vld [vmem:[%s3986_s9 + $0x58] sm:$0xff]   ;;  %v3114_v16 = vld [vmem:[%s3986_s9 + $0x60] sm:$0xff]  }
 0x57f   :  { %3152 = vpow2.f32 %v1570_v13  ;;  %v3110_v13 = vld [vmem:[%s3986_s9 + $0x50] sm:$0xff]  }
 0x580   :  { %v1468_v21 = vmul.f32 1.442695, %v1467_v18  ;;  %v3115_v18 = vld [vmem:[%s3986_s9 + $0xc0] sm:$0xff]  }
 0x581   :  { %v1670_v23 = vpop.xlane.xlu1 %1669 }
 0x582   :  { %3154 = vpow2.f32 %v1468_v21  ;;  %v1671_v24 = vsub.f32 %v1667_v55, %v1670_v23  ;;  %v3118_v21 = vld [vmem:[%s3986_s9 + $0x68] sm:$0xff]  }
 0x583   :  { %3156 = vpow2.f32 %v1774_v19  ;;  %v3116_v19 = vld [vmem:[%s3986_s9 + $0x20] sm:$0xff]   ;;  %v3119_v23 = vld [vmem:[%s3986_s9 + $0xc8] sm:$0xff]  }
 0x584   :  { %v1672_v26 = vmul.f32 1.442695, %v1671_v24  ;;  %v3120_v24 = vld [vmem:[%s3986_s9 + $0x28] sm:$0xff]  }
 0x585   :  { %v1874_v27 = vpop.xlane.xlu1 %1873 }
 0x586   :  { %3158 = vpow2.f32 %v1672_v26  ;;  %v1875_v28 = vsub.f32 %v1871_v6, %v1874_v27  ;;  %v3122_v26 = vld [vmem:[%s3986_s9 + $0x70] sm:$0xff]  }
 0x587   :  { %3160 = vpow2.f32 %v1978_v25  ;;  %v3121_v25 = vld [vmem:[%s3986_s9 + $0x88] sm:$0xff]   ;;  %v3123_v27 = vld [vmem:[%s3986_s9 + $0xd0] sm:$0xff]  }
 0x588   :  { %v3151_v29 = vpop.eup %3150  ;;  %v1876_v30 = vmul.f32 1.442695, %v1875_v28  ;;  %v3124_v28 = vld [vmem:[%s3986_s9 + $0x30] sm:$0xff]  }
 0x589   :  { %v1368_v31 = vsel %vm1258_vm2, %v3151_v29, 0.0  ;;  %v3153_v32 = vpop.eup %3152 }
 0x58a   :  { %3162 = vpow2.f32 %v1876_v30  ;;  %1369 = vadd.xlane.f32.xlu1 %v1368_v31  ;;  %v1572_v34 = vsel %vm1258_vm2, %v3153_v32, 0.0  ;;  %v3126_v30 = vld [vmem:[%s3986_s9 + $0x78] sm:$0xff]  }
 0x58b   :  { %v3127_v31 = vld [vmem:[%s3986_s9 + $0xd8] sm:$0xff]  }
 0x58c   :  { %v3155_v33 = vpop.eup %3154 }
 0x58d   :  { %v1470_v35 = vsel %vm1258_vm2, %v3155_v33, 0.0  ;;  %v3157_v37 = vpop.eup %3156 }
 0x58e   :  { %1573 = vadd.xlane.f32.xlu1 %v1572_v34  ;;  %1471 = vadd.xlane.f32.xlu0 %v1470_v35  ;;  %v1776_v39 = vsel %vm1258_vm2, %v3157_v37, 0.0  ;;  %v3130_v34 = vld [vmem:[%s3986_s9 + $0xe0] sm:$0xff]  }
 0x58f   :  { %v3131_v35 = vld [vmem:[%s3986_s9 + $0xa0] sm:$0xff]  }
 0x590   :  { %v3159_v38 = vpop.eup %3158 }
 0x591   :  { %v1674_v40 = vsel %vm1258_vm2, %v3159_v38, 0.0  ;;  %v3782_v41 = vpop.eup %3160 }
 0x592   :  { %1777 = vadd.xlane.f32.xlu1 %v1776_v39  ;;  %1675 = vadd.xlane.f32.xlu0 %v1674_v40  ;;  %v1980_v43 = vsel %vm1258_vm2, %v3782_v41, 0.0  ;;  %v3134_v39 = vld [vmem:[%s3986_s9 + $0xf0] sm:$0xff]  }
 0x593   :  { %v3135_v40 = vld [vmem:[%s3986_s9 + $0xb0] sm:$0xff]  }
 0x594   :  { %v3163_v42 = vpop.eup %3162 }
 0x595   :  { %v1878_v44 = vsel %vm1258_vm2, %v3163_v42, 0.0 }
 0x596   :  { %1981 = vadd.xlane.f32.xlu1 %v1980_v43  ;;  %1879 = vadd.xlane.f32.xlu0 %v1878_v44 }
 0x617   :  { %v1370_v3 = vpop.xlane.xlu1 %1369 }
 0x618   :  { %3164 = vrcp.f32 %v1370_v3 }
 0x61b   :  { %v1472_v45 = vpop.xlane.xlu0 %1471  ;;  %v1574_v22 = vpop.xlane.xlu1 %1573 }
 0x61c   :  { %3166 = vrcp.f32 %v1472_v45 }
 0x61d   :  { %3168 = vrcp.f32 %v1574_v22 }
 0x61f   :  { %v1676_v50 = vpop.xlane.xlu0 %1675  ;;  %v1778_v58 = vpop.xlane.xlu1 %1777 }
 0x620   :  { %3170 = vrcp.f32 %v1676_v50 }
 0x621   :  { %3172 = vrcp.f32 %v1778_v58 }
 0x622   :  { %v3165_v46 = vpop.eup %3164 }
 0x623   :  { %v1372_v5 = vmul.f32 %v3165_v46, %v3151_v29  ;;  %v1880_v4 = vpop.xlane.xlu0 %1879  ;;  %v1982_v6 = vpop.xlane.xlu1 %1981  ;;  %v3125_v29 = vld [vmem:[%s3986_s9 + $0x90] sm:$0xff]  }
 0x624   :  { %3174 = vrcp.f32 %v1880_v4 }
 0x625   :  { %v1373_v48 = vpack.c.bf16 %v1372_v5, %v1372_v5  ;;  %3176 = vrcp.f32 %v1982_v6 }
 0x626   :  { %v3167_v47 = vpop.eup %3166 }
 0x627   :  { %2832 = vmatmul.mubr.msk.bf16.vlgmr.msra.gmra.mrb[28].mxu1 %vm1258_vm2, %v1373_v48  ;;  %v1474_v49 = vmul.f32 %v3167_v47, %v3155_v33  ;;  %v3169_v53 = vpop.eup %3168  ;;  %v3129_v33 = vld [vmem:[%s3986_s9 + $0x98] sm:$0xff]  }
 0x628   :  { %2842 = vmatpush3.bf16.msra.mxu1 %v3730_v51  ;;  %2843 = vmatprep.mubr.msk.bf16.mxu1 %vm3182_vm0, %v3181_v2  ;;  %v1576_v57 = vmul.f32 %v3169_v53, %v3153_v32  ;;  %v3128_v32 = vld [vmem:[%s3986_s9 + $0x38] sm:$0xff]  }
 0x629   :  { %2853 = vmatprep.subr.bf16.mxu1 %v3181_v2  ;;  %v1475_v52 = vpack.c.bf16 %v1474_v49, %v1474_v49 }
 0x62a   :  { %v1577_v51 = vpack.c.bf16 %v1576_v57, %v1576_v57  ;;  %v3171_v62 = vpop.eup %3170 }
 0x62b   :  { %v1678_v36 = vmul.f32 %v3171_v62, %v3159_v38  ;;  %v3173_v55 = vpop.eup %3172  ;;  %v3133_v38 = vld [vmem:[%s3986_s9 + $0xa8] sm:$0xff]  }
 0x62c   :  { %v1780_v1 = vmul.f32 %v3173_v55, %v3157_v37  ;;  %v3132_v37 = vld [vmem:[%s3986_s9 + $0xe8] sm:$0xff]   ;;  %v3138_v55 = vld [vmem:[%s3987_s11] sm:$0xff]  }
 0x62e   :  { %v3175_v7 = vpop.eup %3174 }
 0x62f   :  { %2844 = vmatmul.mubr.msk.bf16.vlgmr.msra.gmra.mrb[32].mxu1 %vm1258_vm2, %v1475_v52  ;;  %v1882_v8 = vmul.f32 %v3175_v7, %v3163_v42  ;;  %v3177_v9 = vpop.eup %3176  ;;  %v3137_v42 = vld [vmem:[%s3986_s9 + $0xb8] sm:$0xff]  }
 0x630   :  { %2854 = vmatpush3.bf16.msra.mxu1 %v3736_v56  ;;  %2855 = vmatprep.mubr.msk.bf16.mxu1 %vm3182_vm0, %v3181_v2  ;;  %v1679_v56 = vpack.c.bf16 %v1678_v36, %v1678_v36  ;;  %v1984_v10 = vmul.f32 %v3177_v9, %v3782_v41  ;;  %v3136_v41 = vld [vmem:[%s3986_s9 + $0xf8] sm:$0xff]  }
 0x631   :  { %2865 = vmatprep.subr.bf16.mxu1 %v3181_v2 }
 0x632   :  { %v1985_v11 = vpack.c.bf16 %v1984_v10, %v1984_v10 }
 0x637   :  { %2856 = vmatmul.mubr.msk.bf16.vlgmr.msra.gmra.mrb[36].mxu1 %vm1258_vm2, %v1577_v51 }
 0x638   :  { %2866 = vmatpush3.bf16.msra.mxu1 %v3739_v59  ;;  %2867 = vmatprep.mubr.msk.bf16.mxu1 %vm3182_vm0, %v3181_v2  ;;  %v1781_v59 = vpack.c.bf16 %v1780_v1, %v1780_v1 }
 0x639   :  { %2877 = vmatprep.subr.bf16.mxu1 %v3181_v2 }
 0x63f   :  { %2868 = vmatmul.mubr.msk.bf16.vlgmr.msra.gmra.mrb[40].mxu1 %vm1258_vm2, %v1679_v56 }
 0x640   :  { %2878 = vmatpush3.bf16.msra.mxu1 %v3746_v61  ;;  %2879 = vmatprep.mubr.msk.bf16.mxu1 %vm3182_vm0, %v3181_v2  ;;  %v1883_v61 = vpack.c.bf16 %v1882_v8, %v1882_v8 }
 0x641   :  { %2889 = vmatprep.subr.bf16.mxu1 %v3181_v2 }
 0x647   :  { %2880 = vmatmul.mubr.msk.bf16.vlgmr.msra.gmra.mrb[44].mxu1 %vm1258_vm2, %v1781_v59  ;;  %v3139_v59 = vld [vmem:[%s3987_s11 + $0x8] sm:$0xff]  }
 0x648   :  { %2890 = vmatpush3.bf16.msra.mxu1 %v3742_v60  ;;  %2891 = vmatprep.mubr.msk.bf16.mxu1 %vm3182_vm0, %v3181_v2  ;;  %v3106_v60 = vld [vmem:[%s3986_s9 + $0x40] sm:$0xff]  }
 0x649   :  { %2901 = vmatprep.subr.bf16.mxu1 %v3181_v2  ;;  %2738 = vmatprep.subr.bf16.mxu0 %v3106_v60 }
 0x64a   :  { %2739 = vmatpush3.bf16.msra.mxu0 %v3107_v12 }
 0x64f   :  { %2892 = vmatmul.mubr.msk.bf16.vlgmr.msra.gmra.mrb[48].mxu1 %vm1258_vm2, %v1883_v61 }
 0x650   :  { %2902 = vmatpush3.bf16.msra.mxu1 %v3749_v0  ;;  %2903 = vmatprep.mubr.msk.bf16.mxu1 %vm3182_vm0, %v3181_v2  ;;  %v3108_v0 = vld [vmem:[%s3986_s9 + $0x48] sm:$0xff]  }
 0x651   :  { %2740 = vmatprep.subr.bf16.mxu0 %v3108_v0  ;;  %2760 = vmatprep.subr.bf16.mxu1 %v3115_v18 }
 0x652   :  { %2741 = vmatpush3.bf16.msra.mxu0 %v3109_v63  ;;  %v3140_v63 = vld [vmem:[%s3987_s11 + $0x10] sm:$0xff]  }
 0x653   :  { %2742 = vmatprep.subr.bf16.mxu0 %v3110_v13  ;;  %v3141_v13 = vld [vmem:[%s3987_s11 + $0x18] sm:$0xff]  }
 0x656   :  { %2743 = vmatpush3.bf16.msra.mxu0 %v3111_v14  ;;  %v3142_v14 = vld [vmem:[%s3987_s11 + $0x20] sm:$0xff]  }
 0x657   :  { %2904 = vmatmul.mubr.msk.bf16.vlgmr.msra.gmra.mrb[52].mxu1 %vm1258_vm2, %v1985_v11  ;;  %2744 = vmatprep.subr.bf16.mxu0 %v3112_v15  ;;  %v3143_v15 = vld [vmem:[%s3987_s11 + $0x28] sm:$0xff]  }
 0x658   :  { %2761 = vmatpush3.bf16.msra.mxu1 %v3117_v20 }
 0x659   :  { %2762 = vmatprep.subr.bf16.mxu1 %v3119_v23 }
 0x65a   :  { %2745 = vmatpush3.bf16.msra.mxu0 %v3113_v17  ;;  %v3144_v17 = vld [vmem:[%s3987_s11 + $0x30] sm:$0xff]  }
 0x65b   :  { %2746 = vmatprep.subr.bf16.mxu0 %v3114_v16  ;;  %v3145_v16 = vld [vmem:[%s3987_s11 + $0x38] sm:$0xff]  }
 0x65c   :  { %2763 = vmatpush3.bf16.msra.mxu1 %v3121_v25  ;;  %v2655_v25 = vld [vmem:[%s3988_s10] ss:$0 sm:$0xff] }
 0x65d   :  { %2764 = vmatprep.subr.bf16.mxu1 %v3123_v27 }
 0x65e   :  { %2747 = vmatpush3.bf16.msra.mxu0 %v3116_v19 }
 0x65f   :  { %2748 = vmatprep.subr.bf16.mxu0 %v3118_v21 }
 0x660   :  { %2765 = vmatpush3.bf16.msra.mxu1 %v3125_v29 }
 0x661   :  { %2766 = vmatprep.subr.bf16.mxu1 %v3127_v31 }
 0x662   :  { %2749 = vmatpush3.bf16.msra.mxu0 %v3120_v24 }
 0x663   :  { %2750 = vmatprep.subr.bf16.mxu0 %v3122_v26 }
 0x664   :  { %2767 = vmatpush3.bf16.msra.mxu1 %v3129_v33 }
 0x665   :  { %2768 = vmatprep.subr.bf16.mxu1 %v3130_v34 }
 0x666   :  { %2751 = vmatpush3.bf16.msra.mxu0 %v3124_v28 }
 0x667   :  { %2752 = vmatprep.subr.bf16.mxu0 %v3126_v30 }
 0x668   :  { %2769 = vmatpush3.bf16.msra.mxu1 %v3131_v35 }
 0x669   :  { %2770 = vmatprep.subr.bf16.mxu1 %v3132_v37 }
 0x66a   :  { %2753 = vmatpush3.bf16.msra.mxu0 %v3128_v32 }
 0x66b   :  { %2907 = vmatprep.subr.bf16.mxu0 %v3181_v2 }
 0x66c   :  { %2771 = vmatpush3.bf16.msra.mxu1 %v3133_v38  ;;  %v2688_v38 = vld [vmem:[%s3990_s12] ss:$0 sm:$0xff] }
 0x66d   :  { %2772 = vmatprep.subr.bf16.mxu1 %v3134_v39 }
 0x670   :  { %2773 = vmatpush3.bf16.msra.mxu1 %v3135_v40 }
 0x671   :  { %2774 = vmatprep.subr.bf16.mxu1 %v3136_v41 }
 0x674   :  { %2775 = vmatpush3.bf16.msra.mxu1 %v3137_v42 }
 0x6fa   :  { %v1414_v43 = vpop.f32.mrb[28].mxu1 }
 0x6fb   :  { %v2833_v44 = vpop.f32.mrb[29].mxu1 }
 0x6fc   :  { %v1417_v3 = vpop.f32.mrb[30].mxu1 }
 0x6fd   :  { %v2834_v45 = vpop.f32.mrb[31].mxu1 }
 0x702   :  { %v1516_v22 = vpop.f32.mrb[32].mxu1 }
 0x703   :  { %v2845_v46 = vpop.f32.mrb[33].mxu1 }
 0x704   :  { %v1519_v5 = vpop.f32.mrb[34].mxu1 }
 0x705   :  { %v2846_v48 = vpop.f32.mrb[35].mxu1 }
 0x70a   :  { %v1618_v47 = vpop.f32.mrb[36].mxu1 }
 0x70b   :  { %v2857_v49 = vpop.f32.mrb[37].mxu1 }
 0x70c   :  { %v1621_v50 = vpop.f32.mrb[38].mxu1 }
 0x70d   :  { %v2858_v52 = vpop.f32.mrb[39].mxu1 }
 0x712   :  { %v1720_v53 = vpop.f32.mrb[40].mxu1 }
 0x713   :  { %v2032_v57 = vpack.c.bf16 %v1720_v53, %v3770_v54  ;;  %v2869_v58 = vpop.f32.mrb[41].mxu1 }
 0x714   :  { %v1723_v51 = vpop.f32.mrb[42].mxu1 }
 0x715   :  { %v2870_v62 = vpop.f32.mrb[43].mxu1 }
 0x71a   :  { %v1822_v36 = vpop.f32.mrb[44].mxu1 }
 0x71b   :  { %v2033_v4 = vpack.c.bf16 %v1822_v36, %v1414_v43  ;;  %v2881_v56 = vpop.f32.mrb[45].mxu1  ;;  %v3178_v43 = vld [vmem:[%s3979_s0] sm:$0xff] }
 0x71c   :  { %v1825_v1 = vpop.f32.mrb[46].mxu1 }
 0x71d   :  { %v2882_v6 = vpop.f32.mrb[47].mxu1  ;;  %2331 = vmatprep.mubr.bf16.mxu0 %v2033_v4 }
 0x71e   :  { %2332 = vmatmul.mubr.bf16.vlgmr.msra.gmra.mrb[40].mxu0 %v2032_v57 }
 0x71f   :  { %2908 = vmatpush3.bf16.msra.mxu0 %v3138_v55  ;;  %2923 = vmatprep.mubr.msk.bf16.mxu0 %vm3182_vm0, %v3181_v2 }
 0x720   :  { %2909 = vmatprep.subr.bf16.mxu0 %v3181_v2 }
 0x722   :  { %v1924_v54 = vpop.f32.mrb[48].mxu1 }
 0x723   :  { %v2034_v7 = vpack.c.bf16 %v1924_v54, %v1516_v22  ;;  %v2893_v8 = vpop.f32.mrb[49].mxu1  ;;  %2910 = vmatpush3.bf16.msra.mxu0 %v3139_v59 }
 0x724   :  { %v1927_v61 = vpop.f32.mrb[50].mxu1  ;;  %2911 = vmatprep.subr.bf16.mxu0 %v3181_v2 }
 0x725   :  { %v2894_v9 = vpop.f32.mrb[51].mxu1 }
 0x727   :  { %2912 = vmatpush3.bf16.msra.mxu0 %v3140_v63 }
 0x728   :  { %2913 = vmatprep.subr.bf16.mxu0 %v3181_v2 }
 0x72a   :  { %v2026_v10 = vpop.f32.mrb[52].mxu1 }
 0x72b   :  { %v2035_v11 = vpack.c.bf16 %v2026_v10, %v1618_v47  ;;  %v2905_v60 = vpop.f32.mrb[53].mxu1  ;;  %2914 = vmatpush3.bf16.msra.mxu0 %v3141_v13 }
 0x72c   :  { %v2029_v12 = vpop.f32.mrb[54].mxu1  ;;  %2915 = vmatprep.subr.bf16.mxu0 %v3181_v2 }
 0x72d   :  { %v2906_v0 = vpop.f32.mrb[55].mxu1  ;;  %2372 = vmatprep.mubr.bf16.mxu1 %v2035_v11 }
 0x72e   :  { %2373 = vmatmul.mubr.bf16.vlgmr.msra.gmra.mrb[56].mxu1 %v2034_v7 }
 0x72f   :  { %2916 = vmatpush3.bf16.msra.mxu0 %v3142_v14 }
 0x730   :  { %2917 = vmatprep.subr.bf16.mxu0 %v3181_v2 }
 0x733   :  { %2918 = vmatpush3.bf16.msra.mxu0 %v3143_v15 }
 0x734   :  { %2919 = vmatprep.subr.bf16.mxu0 %v3181_v2 }
 0x737   :  { %2920 = vmatpush3.bf16.msra.mxu0 %v3144_v17 }
 0x738   :  { %2921 = vmatprep.subr.bf16.mxu0 %v3181_v2  ;;  %v3179_v2 = vld [vmem:[%s3979_s0 + $0x8] sm:$0xff] }
 0x73b   :  { %2922 = vmatpush3.bf16.msra.mxu0 %v3145_v16 }
 0x7f1   :  { %v2754_v18 = vpop.f32.mrb[40].mxu0 }
 0x7f2   :  { %v2755_v19 = vpop.f32.mrb[41].mxu0 }
 0x7f3   :  { %v2756_v20 = vadd.f32 %v2755_v19, %v2754_v18  ;;  %v2757_v21 = vpop.f32.mrb[42].mxu0 }
 0x7f4   :  { %v2758_v23 = vpop.f32.mrb[43].mxu0 }
 0x7f5   :  { %v2759_v24 = vadd.f32 %v2758_v23, %v2757_v21  ;;  %v2334_v28 = vadd.f32 %v2756_v20, %v2655_v25 }
 0x7f7   :  { %v2337_v32 = vadd.f32 %v2759_v24, %v2655_v25 }
 0x801   :  { %v2776_v26 = vpop.f32.mrb[56].mxu1 }
 0x802   :  { %v2777_v27 = vpop.f32.mrb[57].mxu1 }
 0x803   :  { %v2778_v29 = vadd.f32 %v2777_v27, %v2776_v26  ;;  %v2779_v30 = vpop.f32.mrb[58].mxu1 }
 0x804   :  { %v2780_v31 = vpop.f32.mrb[59].mxu1 }
 0x805   :  { %v2375_v33 = vadd.f32 %v2778_v29, %v2334_v28  ;;  %v2781_v34 = vadd.f32 %v2780_v31, %v2779_v30 }
 0x807   :  { %v2378_v35 = vadd.f32 %v2781_v34, %v2337_v32 }
 0x809   :  { %v2381_v37 = vpack.c.bf16 %v2378_v35, %v2375_v33 }
 0x80b   :  { %2924 = vmatmul.mubr.bf16.vlgmr.msra.gmra.mrb[44].mxu0 %v2381_v37 }
 0x8de   :  { %v2487_v39 = vpop.f32.mrb[44].mxu0 }
 0x8df   :  { %v2488_v40 = vadd.f32 %v2688_v38, %v2487_v39  ;;  %v2925_v41 = vpop.f32.mrb[45].mxu0 }
 0x8e0   :  { %v2490_v42 = vpop.f32.mrb[46].mxu0 }
 0x8e1   :  { %v2494_v44 = vadd.f32 %v3178_v43, %v2488_v40  ;;  %v2491_v3 = vadd.f32 %v2688_v38, %v2490_v42  ;;  %v2926_v45 = vpop.f32.mrb[47].mxu0 }
 0x8e3   :  { %v2496_v22 = vmul.f32 0.7072136, %v2494_v44  ;;  %v2495_v46 = vadd.f32 %v3179_v2, %v2491_v3 }
 0x8e5   :  { %2498 = vst [vmem:[%s3991_s13] sm:$0xff] %v2496_v22  ;;  %v2497_v5 = vmul.f32 0.7072136, %v2495_v46  ;;  %v2508_v48 = vmul.f32 %v2496_v22, %v2496_v22 }
 0x8e7   :  { %2499 = vst [vmem:[%s3991_s13 + $0x8] sm:$0xff] %v2497_v5  ;;  %v2500_v47 = vadd.f32 %v2497_v5, %v2496_v22  ;;  %v2509_v49 = vmul.f32 %v2497_v5, %v2497_v5 }
 0x8e9   :  { %v2501_v50 = vrot.slane %v2500_v47, 4  ;;  %v2510_v52 = vadd.f32 %v2509_v49, %v2508_v48 }
 0x8eb   :  { %v2502_v53 = vadd.f32 %v2501_v50, %v2500_v47  ;;  %v2511_v57 = vrot.slane %v2510_v52, 4 }
 0x8ed   :  { %v2503_v58 = vrot.slane %v2502_v53, 2  ;;  %v2512_v51 = vadd.f32 %v2511_v57, %v2510_v52 }
 0x8ef   :  { %v2504_v62 = vadd.f32 %v2503_v58, %v2502_v53  ;;  %v2513_v36 = vrot.slane %v2512_v51, 2 }
 0x8f1   :  { %v2505_v4 = vrot.slane %v2504_v62, 1  ;;  %v2514_v56 = vadd.f32 %v2513_v36, %v2512_v51 }
 0x8f3   :  { %v2506_v55 = vadd.f32 %v2505_v4, %v2504_v62  ;;  %v2515_v1 = vrot.slane %v2514_v56, 1 }
 0x8f5   :  { %2507 = vst [vmem:[%s3989_s14] sm:$0x1] %v2506_v55  ;;  %v2516_v6 = vadd.f32 %v2515_v1, %v2514_v56 }
 0x8f7   :  { %2517 = vst [vmem:[%s3989_s14 + $0x1] sm:$0x1] %v2516_v6 }

</bundles_post_ra>
